<compile_context>
chip_gen: v7x
topology: tpu7x:2x2x1
jax: 0.10.0
libtpu: 0.0.40
codegen_flags: <defaults>
</compile_context>

<pallas_src>
import jax
import jax.numpy as jnp
from jax.experimental import pallas as pl
from jax.experimental.pallas import tpu as pltpu

VOCAB_SIZE = 128       # small synthetic vocab (one 128-lane tile)
EMBED_DIM = 32         # embedding_dim
CONTEXT_WORDS = 4      # CBOW context window (2 left + 2 right)
HIDDEN = 128           # linear1 output features
BATCH = 256            # number of contexts processed per call
TILE_B = 128           # batch tile (MXU-height aligned); grid=(2,) keeps v7x's 2 TCs busy

# TODO(synk): if VOCAB_SIZE grows to a realistic size (50k+), add a last "arbitrary"
# vocab grid axis over w2_t/logits with an online (running-max) log-softmax instead of
# holding W2^T and the (TILE_B, V) logits resident (resident f32 would blow v7x's
# 64 MiB VMEM); keep output blocks a multiple of 128 lanes.


def cbow_kernel(idx_ref, m_ref, b1_ref, w2_ref, b2_ref, out_ref):
    tb = idx_ref.shape[0]                 # TILE_B
    ctx_v = m_ref.shape[0]                # CONTEXT_WORDS * V
    V = w2_ref.shape[1]

    # One (tb, 4*V) one-hot: for context slot i, lane i*V + idx[:, i] is hot.
    lane = jax.lax.broadcasted_iota(jnp.int32, (tb, ctx_v), 1)
    hot = lane == idx_ref[:, pl.ds(0, 1)]                         # (tb, 4V) bool
    for i in range(1, CONTEXT_WORDS):                             # static unrolled
        hot = hot | (lane == idx_ref[:, pl.ds(i, 1)] + i * V)
    onehot = hot.astype(m_ref.dtype)                              # exact in bf16

    # Fused embedding gather + linear1:
    #   h[b] = sum_i M[i*V + idx[b, i]]  ==  concat(e_0..e_3) @ W1^T
    # One (tb, 4V) @ (4V, HIDDEN) MXU matmul, f32 accumulation.
    h = jnp.dot(onehot, m_ref[...], preferred_element_type=jnp.float32)

    # bias + ReLU in f32 (VPU).
    h = jnp.maximum(h + b1_ref[...], 0.0)

    # linear2 on the MXU, f32 accumulation.
    logits = jnp.dot(h.astype(w2_ref.dtype), w2_ref[...],
                     preferred_element_type=jnp.float32) + b2_ref[...]   # (tb, V)

    # log_softmax(dim=-1): lane-axis reductions (XLU) + exp/log (EUP), all f32.
    m = jnp.max(logits, axis=-1, keepdims=True)
    shifted = logits - m
    lse = jnp.log(jnp.sum(jnp.exp(shifted), axis=-1, keepdims=True))
    out_ref[...] = (shifted - lse).astype(out_ref.dtype)


def cbow_forward(indices, emb, w1_t, b1, w2_t, b2, *,
                 param_dtype=jnp.bfloat16, out_dtype=jnp.float32):
    """Batched CBOW forward. param_dtype is the MXU-input dtype (bf16 default)."""
    B, C = indices.shape
    V, D = emb.shape
    H = w1_t.shape[1]
    assert C == CONTEXT_WORDS and w1_t.shape[0] == C * D
    assert B % TILE_B == 0
    grid = (B // TILE_B,)

    # Fuse embedding table into linear1 once per weight set (f32 math, then cast):
    #   M[i*V + v, :] = emb[v, :] @ W1^T[i*D:(i+1)*D, :]        -> (4*V, HIDDEN)
    w1_r = w1_t.astype(jnp.float32).reshape(C, D, H)
    m = jnp.einsum("vd,cdh->cvh", emb.astype(jnp.float32), w1_r).reshape(C * V, H)

    return pl.pallas_call(
        cbow_kernel,
        out_shape=jax.ShapeDtypeStruct((B, V), out_dtype),
        grid=grid,
        in_specs=[
            pl.BlockSpec((TILE_B, C), lambda b: (b, 0)),          # indices tile
            pl.BlockSpec((C * V, H), lambda b: (0, 0)),           # fused emb@W1^T (resident)
            pl.BlockSpec((1, H), lambda b: (0, 0)),               # b1
            pl.BlockSpec((H, V), lambda b: (0, 0)),               # W2^T (resident)
            pl.BlockSpec((1, V), lambda b: (0, 0)),               # b2
        ],
        out_specs=pl.BlockSpec((TILE_B, V), lambda b: (b, 0)),
        compiler_params=pltpu.CompilerParams(
            dimension_semantics=("parallel",)),                   # megacore on v7x
    )(indices,
      m.astype(param_dtype),
      b1.astype(jnp.float32),
      w2_t.astype(param_dtype),
      b2.astype(jnp.float32))


def reference_forward(indices, emb, w1_t, b1, w2_t, b2):
    B = indices.shape[0]
    embeds = emb[indices].reshape(B, -1)
    h = jnp.maximum(embeds @ w1_t + b1, 0.0)
    logits = h @ w2_t + b2
    return jax.nn.log_softmax(logits, axis=-1)


if __name__ == "__main__":
    key = jax.random.PRNGKey(0)
    k_emb, k_w1, k_b1, k_w2, k_b2, k_idx = jax.random.split(key, 6)

    # Deterministic parameter init (shapes match nn.Embedding / nn.Linear).
    emb = jax.random.normal(k_emb, (VOCAB_SIZE, EMBED_DIM), dtype=jnp.float32)

    fan1 = EMBED_DIM * CONTEXT_WORDS
    w1_t = jax.random.uniform(k_w1, (fan1, HIDDEN), jnp.float32,
                              -1.0 / jnp.sqrt(fan1), 1.0 / jnp.sqrt(fan1))
    b1 = jax.random.uniform(k_b1, (1, HIDDEN), jnp.float32,
                            -1.0 / jnp.sqrt(fan1), 1.0 / jnp.sqrt(fan1))

    fan2 = HIDDEN
    w2_t = jax.random.uniform(k_w2, (fan2, VOCAB_SIZE), jnp.float32,
                              -1.0 / jnp.sqrt(fan2), 1.0 / jnp.sqrt(fan2))
    b2 = jax.random.uniform(k_b2, (1, VOCAB_SIZE), jnp.float32,
                            -1.0 / jnp.sqrt(fan2), 1.0 / jnp.sqrt(fan2))

    # A batch of context windows: each row = 4 word indices.
    indices = jax.random.randint(k_idx, (BATCH, CONTEXT_WORDS), 0, VOCAB_SIZE,
                                 dtype=jnp.int32)

    ref = reference_forward(indices, emb, w1_t, b1, w2_t, b2)

    # Default path: bf16 MXU inputs, f32 accumulation + elementwise (portable fast path).
    out = cbow_forward(indices, emb, w1_t, b1, w2_t, b2)
    jax.block_until_ready(out)
    assert out.shape == (BATCH, VOCAB_SIZE)
    assert float(jnp.max(jnp.abs(out - ref))) < 0.25, "bf16 path diverged"

    # f32 MXU-input path (tight tolerance vs reference).
    out_f32 = cbow_forward(indices, emb, w1_t, b1, w2_t, b2,
                           param_dtype=jnp.float32)
    jax.block_until_ready(out_f32)
    assert out_f32.shape == (BATCH, VOCAB_SIZE)
    assert jnp.allclose(out_f32, ref, atol=1e-4, rtol=1e-4), "f32 mismatch vs reference"

    print("KERNEL_OK")
</pallas_src>

<mosaic_0001>
module attributes {stable_mosaic.version = 11 : i64} {
  func.func @cbow_kernel(%arg0: i32, %arg1: memref<128x4xi32, #tpu.memory_space<vmem>>, %arg2: memref<512x128xbf16, #tpu.memory_space<vmem>>, %arg3: memref<1x128xf32, #tpu.memory_space<vmem>>, %arg4: memref<128x128xbf16, #tpu.memory_space<vmem>>, %arg5: memref<1x128xf32, #tpu.memory_space<vmem>>, %arg6: memref<128x128xf32, #tpu.memory_space<vmem>>) attributes {dimension_semantics = [#tpu.dimension_semantics<parallel>], iteration_bounds = array<i64: 2>, scalar_prefetch = 0 : i64, scratch_operands = 0 : i64, tpu.core_type = #tpu.core_type<tc>, window_params = [{transform_indices = @transform_0, window_bounds = array<i64: 128, 4>}, {pipeline_mode = #tpu.pipeline_mode<synchronous>, transform_indices = @transform_1, window_bounds = array<i64: 512, 128>}, {pipeline_mode = #tpu.pipeline_mode<synchronous>, transform_indices = @transform_2, window_bounds = array<i64: 1, 128>}, {pipeline_mode = #tpu.pipeline_mode<synchronous>, transform_indices = @transform_3, window_bounds = array<i64: 128, 128>}, {pipeline_mode = #tpu.pipeline_mode<synchronous>, transform_indices = @transform_4, window_bounds = array<i64: 1, 128>}, {transform_indices = @transform_5, window_bounds = array<i64: 128, 128>}]} {
    %0 = tpu.iota {dimensions = array<i32: 1>} : vector<128x512xi32>
    %c0 = arith.constant 0 : index
    %c0_0 = arith.constant 0 : index
    %1 = vector.load %arg1[%c0, %c0_0] : memref<128x4xi32, #tpu.memory_space<vmem>>, vector<128x1xi32>
    %2 = vector.broadcast %1 : vector<128x1xi32> to vector<128x512xi32>
    %3 = arith.cmpi eq, %0, %2 : vector<128x512xi32>
    %c0_1 = arith.constant 0 : index
    %c1 = arith.constant 1 : index
    %4 = vector.load %arg1[%c0_1, %c1] : memref<128x4xi32, #tpu.memory_space<vmem>>, vector<128x1xi32>
    %c128_i32 = arith.constant 128 : i32
    %5 = vector.broadcast %c128_i32 : i32 to vector<128x1xi32>
    %6 = arith.addi %4, %5 : vector<128x1xi32>
    %7 = vector.broadcast %6 : vector<128x1xi32> to vector<128x512xi32>
    %8 = arith.cmpi eq, %0, %7 : vector<128x512xi32>
    %9 = arith.ori %3, %8 : vector<128x512xi1>
    %c0_2 = arith.constant 0 : index
    %c2 = arith.constant 2 : index
    %10 = vector.load %arg1[%c0_2, %c2] : memref<128x4xi32, #tpu.memory_space<vmem>>, vector<128x1xi32>
    %c256_i32 = arith.constant 256 : i32
    %11 = vector.broadcast %c256_i32 : i32 to vector<128x1xi32>
    %12 = arith.addi %10, %11 : vector<128x1xi32>
    %13 = vector.broadcast %12 : vector<128x1xi32> to vector<128x512xi32>
    %14 = arith.cmpi eq, %0, %13 : vector<128x512xi32>
    %15 = arith.ori %9, %14 : vector<128x512xi1>
    %c0_3 = arith.constant 0 : index
    %c3 = arith.constant 3 : index
    %16 = vector.load %arg1[%c0_3, %c3] : memref<128x4xi32, #tpu.memory_space<vmem>>, vector<128x1xi32>
    %c384_i32 = arith.constant 384 : i32
    %17 = vector.broadcast %c384_i32 : i32 to vector<128x1xi32>
    %18 = arith.addi %16, %17 : vector<128x1xi32>
    %19 = vector.broadcast %18 : vector<128x1xi32> to vector<128x512xi32>
    %20 = arith.cmpi eq, %0, %19 : vector<128x512xi32>
    %21 = arith.ori %15, %20 : vector<128x512xi1>
    %22 = arith.extui %21 : vector<128x512xi1> to vector<128x512xi32>
    %23 = arith.sitofp %22 : vector<128x512xi32> to vector<128x512xf32>
    %24 = arith.truncf %23 : vector<128x512xf32> to vector<128x512xbf16>
    %c0_4 = arith.constant 0 : index
    %c0_5 = arith.constant 0 : index
    %25 = vector.load %arg2[%c0_4, %c0_5] : memref<512x128xbf16, #tpu.memory_space<vmem>>, vector<512x128xbf16>
    %cst = arith.constant dense<0.000000e+00> : vector<128x128xf32>
    %26 = tpu.matmul %24, %25, %cst {dimension_numbers = #tpu.dot_dimension_numbers<[1], [0], [0], [1], [0, 0, 1, 1], [], []>} : vector<128x512xbf16>, vector<512x128xbf16>, vector<128x128xf32> -> vector<128x128xf32>
    %c0_6 = arith.constant 0 : index
    %c0_7 = arith.constant 0 : index
    %27 = vector.load %arg3[%c0_6, %c0_7] : memref<1x128xf32, #tpu.memory_space<vmem>>, vector<1x128xf32>
    %28 = vector.broadcast %27 : vector<1x128xf32> to vector<128x128xf32>
    %29 = arith.addf %26, %28 : vector<128x128xf32>
    %cst_8 = arith.constant 0.000000e+00 : f32
    %30 = vector.broadcast %cst_8 : f32 to vector<128x128xf32>
    %31 = arith.maximumf %29, %30 : vector<128x128xf32>
    %32 = arith.truncf %31 : vector<128x128xf32> to vector<128x128xbf16>
    %c0_9 = arith.constant 0 : index
    %c0_10 = arith.constant 0 : index
    %33 = vector.load %arg4[%c0_9, %c0_10] : memref<128x128xbf16, #tpu.memory_space<vmem>>, vector<128x128xbf16>
    %cst_11 = arith.constant dense<0.000000e+00> : vector<128x128xf32>
    %34 = tpu.matmul %32, %33, %cst_11 {dimension_numbers = #tpu.dot_dimension_numbers<[1], [0], [0], [1], [0, 0, 1, 1], [], []>} : vector<128x128xbf16>, vector<128x128xbf16>, vector<128x128xf32> -> vector<128x128xf32>
    %c0_12 = arith.constant 0 : index
    %c0_13 = arith.constant 0 : index
    %35 = vector.load %arg5[%c0_12, %c0_13] : memref<1x128xf32, #tpu.memory_space<vmem>>, vector<1x128xf32>
    %36 = vector.broadcast %35 : vector<1x128xf32> to vector<128x128xf32>
    %37 = arith.addf %34, %36 : vector<128x128xf32>
    %cst_14 = arith.constant dense<0xFF800000> : vector<128xf32>
    %38 = vector.multi_reduction <maximumf>, %37, %cst_14 [1] : vector<128x128xf32> to vector<128xf32>
    %39 = vector.shape_cast %38 : vector<128xf32> to vector<128x1xf32>
    %40 = vector.broadcast %39 : vector<128x1xf32> to vector<128x128xf32>
    %41 = arith.subf %37, %40 : vector<128x128xf32>
    %42 = math.exp %41 : vector<128x128xf32>
    %cst_15 = arith.constant dense<0.000000e+00> : vector<128xf32>
    %43 = vector.multi_reduction <add>, %42, %cst_15 [1] : vector<128x128xf32> to vector<128xf32>
    %44 = vector.shape_cast %43 : vector<128xf32> to vector<128x1xf32>
    %45 = math.log %44 : vector<128x1xf32>
    %46 = vector.broadcast %45 : vector<128x1xf32> to vector<128x128xf32>
    %47 = arith.subf %41, %46 : vector<128x128xf32>
    %c0_16 = arith.constant 0 : index
    %c0_17 = arith.constant 0 : index
    %48 = vector.load %arg6[%c0_16, %c0_17] : memref<128x128xf32, #tpu.memory_space<vmem>>, vector<128x128xf32>
    tpu.vector_store %arg6[%c0_16, %c0_17], %47 {strides = array<i32>} : memref<128x128xf32, #tpu.memory_space<vmem>>, vector<128x128xf32>,
    return
  }
  func.func @transform_0(%arg0: i32) -> (i32, i32) {
    %c0_i32 = arith.constant 0 : i32
    %c0_i32_0 = arith.constant 0 : i32
    return %arg0, %c0_i32 : i32, i32
  }
  func.func @transform_1(%arg0: i32) -> (i32, i32) {
    %c0_i32 = arith.constant 0 : i32
    %c0_i32_0 = arith.constant 0 : i32
    %c0_i32_1 = arith.constant 0 : i32
    return %c0_i32, %c0_i32_0 : i32, i32
  }
  func.func @transform_2(%arg0: i32) -> (i32, i32) {
    %c0_i32 = arith.constant 0 : i32
    %c0_i32_0 = arith.constant 0 : i32
    %c0_i32_1 = arith.constant 0 : i32
    return %c0_i32, %c0_i32_0 : i32, i32
  }
  func.func @transform_3(%arg0: i32) -> (i32, i32) {
    %c0_i32 = arith.constant 0 : i32
    %c0_i32_0 = arith.constant 0 : i32
    %c0_i32_1 = arith.constant 0 : i32
    return %c0_i32, %c0_i32_0 : i32, i32
  }
  func.func @transform_4(%arg0: i32) -> (i32, i32) {
    %c0_i32 = arith.constant 0 : i32
    %c0_i32_0 = arith.constant 0 : i32
    %c0_i32_1 = arith.constant 0 : i32
    return %c0_i32, %c0_i32_0 : i32, i32
  }
  func.func @transform_5(%arg0: i32) -> (i32, i32) {
    %c0_i32 = arith.constant 0 : i32
    %c0_i32_0 = arith.constant 0 : i32
    return %arg0, %c0_i32 : i32, i32
  }
}

</mosaic_0001>

<bundles_post_ra>
// kernel: tpu_custom_call.1
= control target key start
LH: loop header
LB: loop body
LE: loop exit
PB: predicated region body
PF: predicated region fallthrough
CT: control target
= control target key end

     0   :  { %10 = vsyncpa [#allocation3], 0  ;;  %s4081_s0 = inlined_call_operand.vmem [shape: s32[256,4], index: 0, kind: input, shape index: {}]   ;;  %s4082_s1 = inlined_call_operand.vmem [shape: bf16[512,128], index: 1, kind: input, shape index: {}]   ;;  %s4083_s2 = inlined_call_operand.vmem [shape: f32[1,128], index: 2, kind: input, shape index: {}]   ;;  %s4084_s3 = inlined_call_operand.hbm [shape: bf16[128,128], index: 3, kind: input, shape index: {}]   ;;  %s4085_s4 = inlined_call_operand.vmem [shape: f32[1,128], index: 4, kind: input, shape index: {}]   ;;  %s4086_s5 = inlined_call_operand.hbm [shape: f32[256,128], index: 5, kind: output, shape index: {}]  }
   0x1   :  { %11 = vsyncpa [#allocation4], 0 }
   0x2   :  { %13 = vsyncpa [#allocation4 + $0x1], 0  ;;  %s2741_s18 = smov 0   ;;  %s2743_s19 = smov 0  }
   0x3   :  { %s2745_s20 = smov 0   ;;  %s2747_s21 = smov 0  }
   0x4 LB: > { %s2762_s22 = sadd.s32 4294967295, %s2698_s21   ;;  %s2024_s23 = sadd.s32 4294967294, %s2698_s21   ;;  %s2698_s21 = sphi %s2747_s21, %s4150_s21   ;;  %s2694_s20 = sphi %s2745_s20, %s4149_s20   ;;  %s2690_s19 = sphi %s2743_s19, %s4148_s19   ;;  %s2686_s18 = sphi %s2741_s18, %s4147_s18  }
   0x5   : > { %s2766_s24 = sadd.s32 1, %s2698_s21   ;;  %s136_s25 = sadd.s32 1, %s2694_s20 }
   0x6   : > { %s133_s26 = ssub.s32 %s2698_s21, %s2766_s24  ;;  %p146_p0 = scmp.ne.s32.totalorder %s2694_s20, %s2690_s19 }
   0x7   : > { %p134_p1 = scmp.eq.s32.totalorder %s133_s26, 0  ;;  %p147_p2 = scmp.eq.s32.totalorder %s2762_s22, 1 }
   0x8   : > { %p152_p3 = scmp.ne.s32.totalorder %s2690_s19, %s2686_s18  ;;  %p153_p4 = scmp.eq.s32.totalorder %s2024_s23, 1 }
   0x9   : > { %s2777_s27 = scalar_select %p134_p1, %s2694_s20, %s136_s25  }
   0xa   : > { %p2779_p5 = por %p147_p2, %p146_p0  ;;  %p2783_p6 = por %p153_p4, %p152_p3 }
   0xb   : > { %p2025_p7 = scmp.ge.s32.totalorder %s2698_s21, 1  ;;  %p160_p8 = scmp.lt.s32.totalorder %s2698_s21, 3 }
   0xc   : > { %s4090_s28 = scalar_select %p2779_p5, 1, 0 }
   0xd   : > { %s4091_s29 = scalar_select %p2783_p6, 1, 0 }
   0xe   : > { %p4087_p9 = scmp.eq.s32.totalorder %s2762_s22, 0  ;;  %p2790_p10 = pnand %p2025_p7, %p160_p8 }
   0xf   : > { %s2700_s6 = smov [#allocation2]   ;;  %s2604_s11 = scalar_lea.hbm %s4084_s3, 1024 }
  0x10   : > { %s4092_s30 = scalar_select %p2790_p10, 1, 0 }
  0x11   : > { %s178_s7 = sshll.u32 %s2700_s6, 4  ;;  %p2407_p11 = pneg %p2790_p10  ;;  %s179_s7 = int_to_ptr.vmem [resolvable:$true] %s178_s7 }
  0x12   : > { %p2605_p13 = scmp.ne.s32.totalorder %s4084_s3, %s2604_s11  ;;  %p2611_p3 = scmp.lt.u32.totalorder %s2604_s11, %s4084_s3 }
  0x13   : > { %p2798_p12 = pnand %p4087_p9, %p2407_p11 }
  0x15   : > { %p2606_p0 = pneg %p2798_p12 }
  0x17   : > { %p2607_p1 = pnand %p2606_p0, %p2605_p13 }
  0x19   : > { %p2608_p2 = pneg %p2607_p1 }
  0x1b   : > { %p2613_p4 = pnand %p2611_p3, %p2608_p2 }
  0x1d   : > { %2616 = shalt.err (!%p2613_p4)
}
  0x1e   : > { %s2617_s16 = scalar_lea.vmem %s179_s7, 1024  ;;  %p2625_p9 = scmp.lt.s32.totalorder %s179_s7, %s179_s7 }
  0x1f   : > { %p2618_p7 = scmp.ne.s32.totalorder %s179_s7, %s2617_s16  ;;  %p2626_p6 = scmp.lt.s32.totalorder %s2617_s16, %s2617_s16 }
  0x21   : > { %p2620_p8 = pnand %p2618_p7, %p2606_p0  ;;  %p2627_p5 = por %p2626_p6, %p2625_p9 }
  0x23   : > { %p2621_p11 = pneg %p2620_p8 }
  0x25   : > { %p2628_p10 = pnand %p2627_p5, %p2621_p11 }
  0x27   : > { %2631 = shalt.err (!%p2628_p10)
}
  0x28   : > { %s2701_s17 = smov 64   ;;  %s2702_s23 = smov 4  }
  0x29   : > { %2410 = dma.hbm_to_vmem [thread:$0]  (!%p2798_p12), %s4084_s3, 1024, %s179_s7, [#allocation3], %s2701_s17, %s2701_s17, %s2702_s23  }
  0x2a   : > { %p4094_p13 = scmp.ne.s32.totalorder %s4092_s30, 0 }
  0x2b   : > { %p4095_p1 = scmp.eq.s32.totalorder (!%p4094_p13), %s2762_s22, 0 }
  0x2c   : > { %206 = sbr.rel (%p4094_p13) target bundleno = 1225 (0x4c9), region = 40 }
  0x33   : > { %2677 = dma.done.wait (%p4095_p1), [#allocation3], 1024   ;;  %p4096_p0 = pmov %p4095_p1 }
  0x34   : > { %s2031_s6 = sshll.u32 %s2762_s22, 4  ;;  %v2703_v0 = vmov 2   ;;  %v2704_v1 = vmov 1   ;;  %v2705_v15 = vmov 3   ;;  %v2500_v18 = vld [vmem:[%s4082_s1 + $0x40] sm:$0xff]   ;;  %v2706_v24 = vmov 0  }
  0x35   : > { %2679 = vsyncadd (%p4096_p0), [#allocation3], 4294966272  ;;  %2461 = vset.pattern.permute.xlu0 %v2703_v0  ;;  %2460 = vset.pattern.permute.xlu1 %v2704_v1  ;;  %p235_p5 = scmp.lt.s32.totalorder %s2031_s6, 31  ;;  %v2501_v19 = vld [vmem:[%s4082_s1 + $0xc0] sm:$0xff]   ;;  %v2504_v25 = vld [vmem:[%s4082_s1 + $0x48] sm:$0xff]   ;;  %s231_s17 = sand.u32 1, %s2690_s19  }
  0x36   : > { %2209 = vmatprep.subr.bf16.mxu0 %v2500_v18  ;;  %2273 = vmatprep.subr.bf16.mxu1 %v2501_v19  ;;  %v2502_v21 = vld [vmem:[%s4082_s1] sm:$0xff]   ;;  %v2505_v26 = vld [vmem:[%s4082_s1 + $0xc8] sm:$0xff]   ;;  %v2508_v32 = vld [vmem:[%s4082_s1 + $0x50] sm:$0xff]   ;;  %s2030_s23 = sshll.u32 %s231_s17, 7  ;;  %s2208_s26 = sshll.u32 %s2762_s22, 11 }
  0x37   : > { %s4152_s6 = smov (!%p235_p5, %s2031_s6), 31  ;;  %v2503_v22 = vld [vmem:[%s4082_s1 + $0x80] sm:$0xff]   ;;  %2210 = vmatpush3.bf16.msra.mxu0 %v2502_v21  ;;  %v2506_v27 = vld [vmem:[%s4082_s1 + $0x8] sm:$0xff]   ;;  %v2509_v33 = vld [vmem:[%s4082_s1 + $0xd0] sm:$0xff]   ;;  %s3996_s25 = scalar_lea.vmem [#allocation5], %s2030_s23 }
  0x38   : > { %s2032_s7 = sshll.u32 %s4152_s6, 3  ;;  %2274 = vmatpush3.bf16.msra.mxu1 %v2503_v22  ;;  %v2507_v28 = vld [vmem:[%s4082_s1 + $0x88] sm:$0xff]   ;;  %2211 = vmatprep.subr.bf16.mxu0 %v2504_v25  ;;  %v2510_v35 = vld [vmem:[%s4082_s1 + $0x10] sm:$0xff]   ;;  %v2512_v38 = vld [vmem:[%s4082_s1 + $0x58] sm:$0xff]   ;;  %s1950_s6 = sshll.u32 %s3996_s25, 4  ;;  %s4033_s6 = int_to_ptr.vmem [resolvable:$true] %s1950_s6 }
  0x39   : > { %s2830_s9 = scalar_lea.vmem %s4081_s0, %s2032_s7  ;;  %2275 = vmatprep.subr.bf16.mxu1 %v2505_v26  ;;  %v2511_v36 = vld [vmem:[%s4082_s1 + $0x90] sm:$0xff]   ;;  %v2513_v39 = vld [vmem:[%s4082_s1 + $0xd8] sm:$0xff]   ;;  %v2516_v44 = vld [vmem:[%s4082_s1 + $0x60] sm:$0xff]   ;;  %s4031_s30 = scalar_lea.hbm %s4086_s5, %s2208_s26 }
  0x3a   : > { %v2833_v2 = vld [vmem:[%s2830_s9] sm:$0xff]  ;;  %v2836_v3 = vld [vmem:[%s2830_s9 + $0x18] sm:$0xff]  ;;  %v2839_v4 = vld [vmem:[%s2830_s9 + $0x8] sm:$0xff]  ;;  %s4040_s22 = scalar_lea.sflag [#allocation4], %s231_s17  ;;  %s2632_s10 = scalar_lea.vmem %s4033_s6, 2048 }
  0x3b   : > { %v567_v5 = vadd.s32 256, %v2833_v2  ;;  %v375_v6 = vadd.s32 128, %v2833_v2  ;;  %v570_v7 = vadd.s32 256, %v2836_v3  ;;  %v376_v8 = vadd.s32 128, %v2839_v4  ;;  %v2846_v9 = vld [vmem:[%s2830_s9 + $0x20] sm:$0xff]  ;;  %v2853_v14 = vld [vmem:[%s2830_s9 + $0x38] sm:$0xff]  ;;  %2212 = vmatpush3.bf16.msra.mxu0 %v2506_v27  ;;  %p2633_p6 = scmp.ne.s32.totalorder %s4033_s6, %s2632_s10 }
  0x3c   : > { %v760_v10 = vadd.s32 384, %v2839_v4  ;;  %v568_v11 = vadd.s32 256, %v2839_v4  ;;  %v763_v12 = vadd.s32 384, %v2846_v9  ;;  %v759_v13 = vadd.s32 384, %v2833_v2  ;;  %v2859_v17 = vld [vmem:[%s2830_s9 + $0x10] sm:$0xff]  ;;  %v2876_v23 = vld [vmem:[%s2830_s9 + $0x28] sm:$0xff]  ;;  %2276 = vmatpush3.bf16.msra.mxu1 %v2507_v28  ;;  %2213 = vmatprep.subr.bf16.mxu0 %v2508_v32 }
  0x3d   : > { %584 = vperm.xlu0 %2461, %v567_v5   ;;  %392 = vperm.xlu1 %2460, %v375_v6   ;;  %v766_v16 = vadd.s32 384, %v2853_v14  ;;  %v377_v20 = vadd.s32 128, %v2859_v17  ;;  %v380_v29 = vadd.s32 128, %v2876_v23  ;;  %v2895_v30 = vld [vmem:[%s2830_s9 + $0x40] sm:$0xff]  ;;  %v2899_v31 = vld [vmem:[%s2830_s9 + $0x58] sm:$0xff]  ;;  %v378_v34 = vadd.s32 128, %v2836_v3 }
  0x3e   : > { %2277 = vmatprep.subr.bf16.mxu1 %v2509_v33  ;;  %v383_v37 = vadd.s32 128, %v2895_v30  ;;  %v569_v40 = vadd.s32 256, %v2859_v17  ;;  %v386_v41 = vadd.s32 128, %v2899_v31  ;;  %v2514_v42 = vld [vmem:[%s4082_s1 + $0x18] sm:$0xff]   ;;  %v2517_v45 = vld [vmem:[%s4082_s1 + $0xe0] sm:$0xff]   ;;  %v761_v48 = vadd.s32 384, %v2859_v17 }
  0x3f   : > { %2214 = vmatpush3.bf16.msra.mxu0 %v2510_v35  ;;  %v2515_v43 = vld [vmem:[%s4082_s1 + $0x98] sm:$0xff]   ;;  %v2518_v46 = vld [vmem:[%s4082_s1 + $0x20] sm:$0xff]   ;;  %v2520_v49 = vld [vmem:[%s4082_s1 + $0x68] sm:$0xff]   ;;  %v762_v51 = vadd.s32 384, %v2836_v3  ;;  %v379_v62 = vadd.s32 128, %v2846_v9  ;;  %v574_v19 = vadd.s32 256, %v2853_v14 }
  0x40   : > { %2278 = vmatpush3.bf16.msra.mxu1 %v2511_v36  ;;  %2215 = vmatprep.subr.bf16.mxu0 %v2512_v38  ;;  %v2519_v47 = vld [vmem:[%s4082_s1 + $0xa0] sm:$0xff]   ;;  %v2521_v50 = vld [vmem:[%s4082_s1 + $0xe8] sm:$0xff]   ;;  %v2524_v54 = vld [vmem:[%s4082_s1 + $0x70] sm:$0xff]   ;;  %v575_v25 = vadd.s32 256, %v2895_v30  ;;  %v767_v26 = vadd.s32 384, %v2895_v30  ;;  %v578_v35 = vadd.s32 256, %v2899_v31 }
  0x41   : > { %593 = vperm.xlu0 %2461, %v570_v7   ;;  %395 = vperm.xlu1 %2460, %v376_v8   ;;  %v2522_v52 = vld [vmem:[%s4082_s1 + $0x28] sm:$0xff]   ;;  %v2525_v55 = vld [vmem:[%s4082_s1 + $0xf0] sm:$0xff]   ;;  %v2528_v58 = vld [vmem:[%s4082_s1 + $0x78] sm:$0xff]   ;;  %v764_v7 = vadd.s32 384, %v2876_v23  ;;  %v770_v38 = vadd.s32 384, %v2899_v31  ;;  %p4145_p9 = scmp.ne.s32.totalorder %s4090_s28, 0 }
  0x42   : > { %2279 = vmatprep.subr.bf16.mxu1 %v2513_v39  ;;  %v2523_v53 = vld [vmem:[%s4082_s1 + $0xa8] sm:$0xff]   ;;  %v2526_v56 = vld [vmem:[%s4082_s1 + $0x30] sm:$0xff]   ;;  %v2529_v59 = vld [vmem:[%s4082_s1 + $0xf8] sm:$0xff]   ;;  %s2708_s11 = smov [#allocation5]  }
  0x43   : > { %2216 = vmatpush3.bf16.msra.mxu0 %v2514_v42  ;;  %v2527_v57 = vld [vmem:[%s4082_s1 + $0xb0] sm:$0xff]   ;;  %v2530_v60 = vld [vmem:[%s4082_s1 + $0x38] sm:$0xff]   ;;  %v256_v8 = vld [vmem:[%s2830_s9 + $0x48] sm:$0xff]  ;;  %p2634_p10 = pnand %p2633_p6, %p4145_p9  ;;  %s2636_s12 = sshll.u32 %s2708_s11, 4  ;;  %s2637_s12 = int_to_ptr.vmem [resolvable:$false] %s2636_s12 }
  0x44   : > { %2280 = vmatpush3.bf16.msra.mxu1 %v2515_v43  ;;  %2217 = vmatprep.subr.bf16.mxu0 %v2516_v44  ;;  %v2531_v61 = vld [vmem:[%s4082_s1 + $0xb8] sm:$0xff]   ;;  %v2992_v63 = vld [vmem:[%s2830_s9 + $0x50] sm:$0xff]  ;;  %v768_v27 = vadd.s32 384, %v256_v8  ;;  %s2638_s13 = scalar_lea.vmem %s2637_s12, 4096  ;;  %p2639_p2 = scmp.lt.s32.totalorder %s4033_s6, %s2637_s12 }
  0x45   : > { %2467 = vset.pattern.permute.xlu0 %v2705_v15  ;;  %2462 = vset.pattern.permute.xlu1 %v2703_v0  ;;  %v253_v5 = vld [vmem:[%s2830_s9 + $0x30] sm:$0xff]  ;;  %v3025_v22 = vld [vmem:[%s2830_s9 + $0x78] sm:$0xff]  ;;  %v385_v28 = vadd.s32 128, %v2992_v63  ;;  %p2635_p12 = pneg %p2634_p10  ;;  %p2640_p3 = scmp.lt.s32.totalorder %s2638_s13, %s2632_s10 }
  0x46   : > { %779 = vperm.xlu0 %2467, %v760_v10   ;;  %587 = vperm.xlu1 %2462, %v568_v11   ;;  %v573_v6 = vadd.s32 256, %v253_v5  ;;  %v3008_v10 = vld [vmem:[%s2830_s9 + $0x60] sm:$0xff]  ;;  %v3018_v18 = vld [vmem:[%s2830_s9 + $0x70] sm:$0xff]  ;;  %v765_v21 = vadd.s32 384, %v253_v5 }
  0x47   : > { %2281 = vmatprep.subr.bf16.mxu1 %v2517_v45  ;;  %2218 = vmatpush3.bf16.msra.mxu0 %v2518_v46  ;;  %v579_v11 = vadd.s32 256, %v3008_v10  ;;  %v387_v43 = vadd.s32 128, %v3008_v10  ;;  %p2641_p4 = por %p2640_p3, %p2639_p2 }
  0x48   : > { %2282 = vmatpush3.bf16.msra.mxu1 %v2519_v47  ;;  %2219 = vmatprep.subr.bf16.mxu0 %v2520_v49  ;;  %v242_v47 = vlaneseq }
  0x49   : > { %2283 = vmatprep.subr.bf16.mxu1 %v2521_v50  ;;  %p2642_p7 = pnand %p2641_p4, %p2635_p12 }
  0x4a   : > { %788 = vperm.xlu0 %2467, %v763_v12   ;;  %2463 = vset.pattern.permute.xlu1 %v2705_v15  ;;  %v381_v12 = vadd.s32 128, %v253_v5 }
  0x4b   : > { %776 = vperm.xlu1 %2463, %v759_v13   ;;  %2220 = vmatpush3.bf16.msra.mxu0 %v2522_v52  ;;  %v769_v13 = vadd.s32 384, %v2992_v63 }
  0x4c   : > { %2284 = vmatpush3.bf16.msra.mxu1 %v2523_v53  ;;  %2221 = vmatprep.subr.bf16.mxu0 %v2524_v54  ;;  %v771_v54 = vadd.s32 384, %v3008_v10 }
  0x4d   : > { %2285 = vmatprep.subr.bf16.mxu1 %v2525_v55 }
  0x4e   : > { %797 = vperm.xlu0 %2467, %v766_v16   ;;  %v382_v16 = vadd.s32 128, %v2853_v14 }
  0x4f   : > { %2464 = vset.pattern.permute.xlu1 %v2706_v24  ;;  %2222 = vmatpush3.bf16.msra.mxu0 %v2526_v56 }
  0x50   : > { %270 = vperm.xlu1 %2464, %v2859_v17   ;;  %2286 = vmatpush3.bf16.msra.mxu1 %v2527_v57 }
  0x51   : > { %2223 = vmatprep.subr.bf16.mxu0 %v2528_v58  ;;  %2287 = vmatprep.subr.bf16.mxu1 %v2529_v59 }
  0x52   : > { %2477 = vset.pattern.permute.xlu0 %v2704_v1 }
  0x53   : > { %398 = vperm.xlu0 %2477, %v377_v20   ;;  %2224 = vmatpush3.bf16.msra.mxu0 %v2530_v60  ;;  %v389_v20 = vadd.s32 128, %v3018_v18 }
  0x54   : > { %273 = vperm.xlu1 %2464, %v2836_v3   ;;  %2288 = vmatpush3.bf16.msra.mxu1 %v2531_v61  ;;  %v2998_v3 = vld [vmem:[%s2830_s9 + $0x68] sm:$0xff] }
  0x55   : > { %v772_v17 = vadd.s32 384, %v2998_v3  ;;  %v388_v45 = vadd.s32 128, %v2998_v3  ;;  %v580_v50 = vadd.s32 256, %v2998_v3  ;;  %v2537_v61 = vld [vmem:[#allocation2 + $0x28] sm:$0xff]  }
  0x57   : > { %407 = vperm.xlu0 %2477, %v380_v29  }
  0x58   : > { %2465 = vset.pattern.permute.xlu1 %v2704_v1 }
  0x59   : > { %401 = vperm.xlu1 %2465, %v378_v34  }
  0x5b   : > { %416 = vperm.xlu0 %2477, %v383_v37  }
  0x5d   : > { %2466 = vset.pattern.permute.xlu1 %v2703_v0 }
  0x5e   : > { %590 = vperm.xlu1 %2466, %v569_v40  }
  0x5f   : > { %425 = vperm.xlu0 %2477, %v386_v41  }
  0x62   : > { %2468 = vset.pattern.permute.xlu1 %v2705_v15 }
  0x63   : > { %2484 = vset.pattern.permute.xlu0 %v2706_v24  ;;  %782 = vperm.xlu1 %2468, %v761_v48  }
  0x64   : > { %264 = vperm.xlu0 %2484, %v2833_v2   ;;  %v571_v2 = vadd.s32 256, %v2846_v9 }
  0x67   : > { %785 = vperm.xlu1 %2468, %v762_v51   ;;  %v3083_v51 = vand.u32 127, %v242_v47 }
  0x68   : > { %267 = vperm.xlu0 %2484, %v2839_v4   ;;  %v572_v4 = vadd.s32 256, %v2876_v23 }
  0x69   : > { %v3092_v55 = vadd.s32 128, %v3083_v51  ;;  %v3098_v57 = vadd.s32 384, %v3083_v51 }
  0x6b   : > { %2469 = vset.pattern.permute.xlu1 %v2706_v24 }
  0x6c   : > { %279 = vperm.xlu1 %2469, %v2876_v23   ;;  %276 = vperm.xlu0 %2484, %v2846_v9   ;;  %v576_v9 = vadd.s32 256, %v256_v8  ;;  %v582_v23 = vadd.s32 256, %v3025_v22 }
  0x70   : > { %2470 = vset.pattern.permute.xlu1 %v2704_v1  ;;  %285 = vperm.xlu0 %2484, %v2853_v14   ;;  %v384_v14 = vadd.s32 128, %v256_v8 }
  0x71   : > { %404 = vperm.xlu1 %2470, %v379_v62  }
  0x74   : > { %294 = vperm.xlu0 %2484, %v2992_v63  }
  0x75   : > { %2471 = vset.pattern.permute.xlu1 %v2703_v0 }
  0x76   : > { %596 = vperm.xlu1 %2471, %v571_v2   ;;  %v2707_v2 = vmov 1.0|1.0  }
  0x78   : > { %303 = vperm.xlu0 %2484, %v2998_v3  }
  0x7a   : > { %599 = vperm.xlu1 %2471, %v572_v4   ;;  %v390_v4 = vadd.s32 128, %v3025_v22 }
  0x7c   : > { %2488 = vset.pattern.permute.xlu0 %v2703_v0 }
  0x7d   : > { %602 = vperm.xlu0 %2488, %v573_v6  }
  0x7e   : > { %2472 = vset.pattern.permute.xlu1 %v2705_v15 }
  0x7f   : > { %791 = vperm.xlu1 %2472, %v764_v7   ;;  %v4109_v7 = vmov 0 }
  0x81   : > { %611 = vperm.xlu0 %2488, %v576_v9  }
  0x83   : > { %2473 = vset.pattern.permute.xlu1 %v2706_v24 }
  0x84   : > { %282 = vperm.xlu1 %2473, %v253_v5  }
  0x85   : > { %620 = vperm.xlu0 %2488, %v579_v11   ;;  %v4116_v11 = vmov 0 }
  0x88   : > { %2474 = vset.pattern.permute.xlu1 %v2704_v1 }
  0x89   : > { %410 = vperm.xlu1 %2474, %v381_v12   ;;  %2490 = vset.pattern.permute.xlu0 %v2705_v15  ;;  %v3247_v12 = vadd.s32 256, %v3083_v51 }
  0x8a   : > { %806 = vperm.xlu0 %2490, %v769_v13  }
  0x8d   : > { %413 = vperm.xlu1 %2474, %v382_v16   ;;  %v773_v16 = vadd.s32 384, %v3018_v18 }
  0x8e   : > { %815 = vperm.xlu0 %2490, %v772_v17   ;;  %v4122_v17 = vmov 0 }
  0x91   : > { %2475 = vset.pattern.permute.xlu1 %v2703_v0 }
  0x92   : > { %605 = vperm.xlu1 %2475, %v574_v19   ;;  %2494 = vset.pattern.permute.xlu0 %v2704_v1 }
  0x93   : > { %434 = vperm.xlu0 %2494, %v389_v20   ;;  %v4128_v20 = vmov 0 }
  0x96   : > { %2476 = vset.pattern.permute.xlu1 %v2705_v15 }
  0x97   : > { %794 = vperm.xlu1 %2476, %v765_v21   ;;  %2497 = vset.pattern.permute.xlu0 %v2703_v0  ;;  %v774_v21 = vadd.s32 384, %v3025_v22 }
  0x98   : > { %629 = vperm.xlu0 %2497, %v582_v23  }
  0x9b   : > { %2478 = vset.pattern.permute.xlu1 %v2706_v24 }
  0x9c   : > { %288 = vperm.xlu1 %2478, %v2895_v30   ;;  %2499 = vset.pattern.permute.xlu0 %v2705_v15  ;;  %v577_v30 = vadd.s32 256, %v2992_v63 }
  0xa0   : > { %291 = vperm.xlu1 %2478, %v256_v8  }
  0xa4   : > { %2479 = vset.pattern.permute.xlu1 %v2704_v1 }
  0xa5   : > { %419 = vperm.xlu1 %2479, %v384_v14  }
  0xa9   : > { %2480 = vset.pattern.permute.xlu1 %v2703_v0 }
  0xaa   : > { %608 = vperm.xlu1 %2480, %v575_v25  }
  0xae   : > { %2481 = vset.pattern.permute.xlu1 %v2705_v15 }
  0xaf   : > { %800 = vperm.xlu1 %2481, %v767_v26  }
  0xb3   : > { %803 = vperm.xlu1 %2481, %v768_v27  }
  0xb7   : > { %2482 = vset.pattern.permute.xlu1 %v2706_v24 }
  0xb8   : > { %297 = vperm.xlu1 %2482, %v2899_v31  }
  0xbc   : > { %2483 = vset.pattern.permute.xlu1 %v2704_v1  ;;  %v3042_v29 = vpop.permute.xlu1 %392  ;;  %v3044_v32 = vpop.permute.xlu0 %584 }
  0xbd   : > { %422 = vperm.xlu1 %2483, %v385_v28   ;;  %vm632_vm0 = vcmp.eq.s32.totalorder %v3092_v55, %v3044_v32  ;;  %vm440_vm3 = vcmp.eq.s32.totalorder %v3092_v55, %v3042_v29  ;;  %vm442_vm10 = vcmp.eq.s32.totalorder %v3098_v57, %v3042_v29 }
  0xc0   : > { %v3047_v33 = vpop.permute.xlu1 %395  ;;  %v3049_v34 = vpop.permute.xlu0 %593 }
  0xc1   : > { %2485 = vset.pattern.permute.xlu1 %v2703_v0  ;;  %vm444_vm13 = vcmp.eq.s32.totalorder %v3092_v55, %v3047_v33 }
  0xc2   : > { %614 = vperm.xlu1 %2485, %v577_v30  }
  0xc5   : > { %v3053_v36 = vpop.permute.xlu1 %587  ;;  %v3055_v37 = vpop.permute.xlu0 %779 }
  0xc6   : > { %617 = vperm.xlu1 %2485, %v578_v35   ;;  %vm828_vm14 = vcmp.eq.s32.totalorder %v3092_v55, %v3055_v37 }
  0xc9   : > { %v3058_v39 = vpop.permute.xlu0 %788 }
  0xca   : > { %2486 = vset.pattern.permute.xlu1 %v2705_v15  ;;  %v3061_v40 = vpop.permute.xlu1 %776 }
  0xcb   : > { %809 = vperm.xlu1 %2486, %v770_v38   ;;  %vm824_vm7 = vcmp.eq.s32.totalorder %v3092_v55, %v3061_v40 }
  0xcd   : > { %v3063_v41 = vpop.permute.xlu0 %797 }
  0xcf   : > { %2487 = vset.pattern.permute.xlu1 %v2706_v24  ;;  %v3066_v42 = vpop.permute.xlu1 %270 }
  0xd0   : > { %300 = vperm.xlu1 %2487, %v3008_v10   ;;  %vm320_vm8 = vcmp.eq.s32.totalorder %v3092_v55, %v3066_v42  ;;  %v4113_v10 = vmov 0 }
  0xd2   : > { %v3070_v44 = vpop.permute.xlu0 %398 }
  0xd3   : > { %v3072_v31 = vpop.permute.xlu1 %273  ;;  %vm448_vm1 = vcmp.eq.s32.totalorder %v3092_v55, %v3070_v44 }
  0xd4   : > { %2489 = vset.pattern.permute.xlu1 %v2704_v1  ;;  %vm3127_vm11 = vmor %vm320_vm8, %vm448_vm1  ;;  %vm636_vm1 = vcmp.eq.s32.totalorder %v3092_v55, %v3053_v36  ;;  %vm446_vm8 = vcmp.eq.s32.totalorder %v3098_v57, %v3047_v33 }
  0xd5   : > { %428 = vperm.xlu1 %2489, %v387_v43   ;;  %v2532_v43 = vld [vmem:[#allocation2] sm:$0xff]  }
  0xd6   : > { %v3076_v46 = vpop.permute.xlu0 %407  ;;  %2353 = vmatprep.subr.bf16.mxu0 %v2532_v43  ;;  %2385 = vmatprep.subr.bf16.mxu1 %v2532_v43 }
  0xd8   : > { %v3078_v48 = vpop.permute.xlu1 %401 }
  0xd9   : > { %431 = vperm.xlu1 %2489, %v388_v45   ;;  %v2534_v45 = vld [vmem:[#allocation2 + $0x10] sm:$0xff]  }
  0xda   : > { %v3080_v49 = vpop.permute.xlu0 %416 }
  0xdd   : > { %2491 = vset.pattern.permute.xlu1 %v2703_v0  ;;  %v3086_v52 = vpop.permute.xlu1 %590 }
  0xde   : > { %623 = vperm.xlu1 %2491, %v580_v50   ;;  %v3088_v53 = vpop.permute.xlu0 %425 }
  0xe2   : > { %2492 = vset.pattern.permute.xlu1 %v2705_v15  ;;  %v3095_v56 = vpop.permute.xlu1 %782 }
  0xe3   : > { %v3100_v58 = vpop.permute.xlu0 %264  ;;  %812 = vperm.xlu1 %2492, %v771_v54  }
  0xe4   : > { %vm312_vm2 = vcmp.eq.s32.totalorder %v3092_v55, %v3100_v58  ;;  %vm314_vm5 = vcmp.eq.s32.totalorder %v3098_v57, %v3100_v58 }
  0xe5   : > { %vm504_vm4 = vmor %vm312_vm2, %vm440_vm3 }
  0xe6   : > { %v3112_v59 = vpop.permute.xlu1 %785  ;;  %vm696_vm6 = vmor %vm504_vm4, %vm632_vm0  ;;  %vm452_vm4 = vcmp.eq.s32.totalorder %v3092_v55, %v3078_v48 }
  0xe7   : > { %v3118_v60 = vpop.permute.xlu0 %267  ;;  %2493 = vset.pattern.permute.xlu1 %v2706_v24  ;;  %vm3121_vm9 = vmor %vm696_vm6, %vm824_vm7  ;;  %v2538_v24 = vld [vmem:[#allocation2 + $0x30] sm:$0xff]  }
  0xe8   : > { %306 = vperm.xlu1 %2493, %v3018_v18   ;;  %vm316_vm12 = vcmp.eq.s32.totalorder %v3092_v55, %v3118_v60  ;;  %vm3138_vm15 = vmor %vm314_vm5, %vm442_vm10  ;;  %vm318_vm3 = vcmp.eq.s32.totalorder %v3098_v57, %v3118_v60  ;;  %vm634_vm5 = vcmp.eq.s32.totalorder %v3098_v57, %v3044_v32  ;;  %vm324_vm10 = vcmp.eq.s32.totalorder %v3092_v55, %v3072_v31 }
  0xe9   : > { %vm508_vm0 = vmor %vm316_vm12, %vm444_vm13 }
  0xea   : > { %vm700_vm2 = vmor %vm508_vm0, %vm636_vm1  ;;  %vm450_vm0 = vcmp.eq.s32.totalorder %v3098_v57, %v3070_v44  ;;  %vm638_vm1 = vcmp.eq.s32.totalorder %v3098_v57, %v3053_v36 }
  0xeb   : > { %v3148_v63 = vpop.permute.xlu1 %279  ;;  %vm892_vm6 = vmor %vm700_vm2, %vm828_vm14  ;;  %vm640_vm14 = vcmp.eq.s32.totalorder %v3092_v55, %v3086_v52  ;;  %v3398_v27 = vpop.permute.xlu0 %276 }
  0xec   : > { %309 = vperm.xlu1 %2493, %v3025_v22   ;;  %vm2130_vm7 = vmpackc.low %vm892_vm6, %vm3121_vm9  ;;  %vm454_vm9 = vcmp.eq.s32.totalorder %v3098_v57, %v3078_v48  ;;  %vm826_vm6 = vcmp.eq.s32.totalorder %v3098_v57, %v3061_v40 }
  0xed   : > { %2131 = vmatprep.mubr.msk.bf16.mxu0 %vm2130_vm7, %v2707_v2  ;;  %vm510_vm12 = vmor %vm318_vm3, %vm446_vm8  ;;  %vm830_vm3 = vcmp.eq.s32.totalorder %v3098_v57, %v3055_v37  ;;  %vm326_vm7 = vcmp.eq.s32.totalorder %v3098_v57, %v3072_v31  ;;  %vm311_vm8 = vcmp.eq.s32.totalorder %v3083_v51, %v3100_v58 }
  0xee   : > { %vm3160_vm13 = vmor %vm324_vm10, %vm452_vm4 }
  0xef   : > { %vm698_vm2 = vmor %vm3138_vm15, %vm634_vm5  ;;  %vm322_vm5 = vcmp.eq.s32.totalorder %v3098_v57, %v3066_v42  ;;  %v3442_v30 = vpop.permute.xlu0 %285 }
  0xf0   : > { %vm702_vm4 = vmor %vm510_vm12, %vm638_vm1  ;;  %2495 = vset.pattern.permute.xlu1 %v2704_v1  ;;  %v3200_v8 = vpop.permute.xlu1 %404  ;;  %vm451_vm1 = vcmp.eq.s32.totalorder %v3083_v51, %v3078_v48  ;;  %v581_v1 = vadd.s32 256, %v3018_v18  ;;  %v4124_v18 = vmov 0 }
  0xf1   : > { %vm3183_vm10 = vmor %vm698_vm2, %vm826_vm6  ;;  %437 = vperm.xlu1 %2495, %v390_v4  }
  0xf2   : > { %vm3189_vm15 = vmor %vm3127_vm11, %vm640_vm14  ;;  %vm315_vm14 = vcmp.eq.s32.totalorder %v3083_v51, %v3118_v60  ;;  %vm439_vm11 = vcmp.eq.s32.totalorder %v3083_v51, %v3042_v29 }
  0xf3   : > { %vm3195_vm12 = vmor %vm326_vm7, %vm454_vm9 }
  0xf4   : > { %v4110_v7 = vsel %vm3195_vm12, 4294967295, %v4109_v7  ;;  %vm894_vm2 = vmor %vm702_vm4, %vm830_vm3  ;;  %vm323_vm3 = vcmp.eq.s32.totalorder %v3083_v51, %v3072_v31 }
  0xf5   : > { %vm3211_vm9 = vmor %vm322_vm5, %vm450_vm0  ;;  %vm443_vm0 = vcmp.eq.s32.totalorder %v3083_v51, %v3047_v33  ;;  %2496 = vset.pattern.permute.xlu1 %v2703_v0  ;;  %v3259_v13 = vpop.permute.xlu1 %596  ;;  %v4120_v0 = vmov 0 }
  0xf6   : > { %vm2162_vm7 = vmpackc.low %vm894_vm2, %vm3183_vm10  ;;  %vm319_vm10 = vcmp.eq.s32.totalorder %v3083_v51, %v3066_v42  ;;  %626 = vperm.xlu1 %2496, %v581_v1  }
  0xf7   : > { %2163 = vmatprep.mubr.msk.bf16.mxu1 %vm2162_vm7, %v2707_v2  ;;  %vm503_vm4 = vmor %vm311_vm8, %vm439_vm11  ;;  %vm4115_vm7 = vcmp.eq.s32.totalorder %v3083_v51, %v3070_v44  ;;  %vm4118_vm11 = vcmp.eq.s32.totalorder %v3083_v51, %v3044_v32  ;;  %vm313_vm8 = vcmp.eq.s32.totalorder %v3247_v12, %v3100_v58 }
  0xf8   : > { %vm3235_vm5 = vmor %vm323_vm3, %vm451_vm1  ;;  %vm635_vm1 = vcmp.eq.s32.totalorder %v3083_v51, %v3053_v36  ;;  %vm827_vm3 = vcmp.eq.s32.totalorder %v3083_v51, %v3055_v37 }
  0xf9   : > { %v4114_v10 = vsel %vm3235_vm5, 4294967295, %v4113_v10  ;;  %vm507_vm2 = vmor %vm315_vm14, %vm443_vm0  ;;  %v3293_v19 = vpop.permute.xlu1 %599 }
  0xfa   : > { %vm3242_vm6 = vmor %vm319_vm10, %vm4115_vm7  ;;  %vm823_vm10 = vcmp.eq.s32.totalorder %v3083_v51, %v3061_v40  ;;  %vm832_vm7 = vcmp.eq.s32.totalorder %v3092_v55, %v3095_v56  ;;  %2498 = vset.pattern.permute.xlu1 %v2705_v15 }
  0xfb   : > { %v4117_v11 = vsel %vm3242_vm6, 4294967295, %v4116_v11  ;;  %vm695_vm14 = vmor %vm503_vm4, %vm4118_vm11  ;;  %vm642_vm4 = vcmp.eq.s32.totalorder %v3098_v57, %v3086_v52  ;;  %vm4119_vm6 = vcmp.eq.s32.totalorder %v3092_v55, %v3049_v34  ;;  %vm441_vm11 = vcmp.eq.s32.totalorder %v3247_v12, %v3042_v29  ;;  %818 = vperm.xlu1 %2498, %v773_v16   ;;  %v3887_v16 = vld [vmem:[%s4083_s2] ss:$0 sm:$0xff] }
  0xfc   : > { %vm699_vm0 = vmor %vm507_vm2, %vm635_vm1  ;;  %vm317_vm2 = vcmp.eq.s32.totalorder %v3247_v12, %v3118_v60 }
  0xfd   : > { %vm887_vm5 = vmor %vm695_vm14, %vm823_vm10  ;;  %vm633_vm14 = vcmp.eq.s32.totalorder %v3247_v12, %v3044_v32 }
  0xfe   : > { %vm891_vm1 = vmor %vm699_vm0, %vm827_vm3  ;;  %vm4130_vm0 = vnez %v4117_v11  ;;  %v3357_v23 = vpop.permute.xlu1 %791 }
  0xff   : > { %vm3278_vm12 = vmor %vm3160_vm13, %vm4119_vm6  ;;  %vm445_vm13 = vcmp.eq.s32.totalorder %v3247_v12, %v3047_v33  ;;  %821 = vperm.xlu1 %2498, %v774_v21  }
 0x100   : > { %v4121_v0 = vsel %vm3278_vm12, 4294967295, %v4120_v0  ;;  %vm2132_vm10 = vmpackc.low %vm891_vm1, %vm887_vm5  ;;  %vm4126_vm1 = vcmp.eq.s32.totalorder %v3098_v57, %v3049_v34 }
 0x101   : > { %vm3289_vm3 = vmor %vm3189_vm15, %vm832_vm7  ;;  %2133 = vmatmul.mubr.msk.bf16.vlgmr.msra.gmra.mrb[0].mxu0 %vm2132_vm10, %v2707_v2  ;;  %vm639_vm15 = vcmp.eq.s32.totalorder %v3083_v51, %v3086_v52  ;;  %vm453_vm10 = vcmp.eq.s32.totalorder %v3247_v12, %v3078_v48 }
 0x102   : > { %v4123_v17 = vsel %vm3289_vm3, 4294967295, %v4122_v17  ;;  %vm505_vm6 = vmor %vm313_vm8, %vm441_vm11  ;;  %vm4127_vm8 = vnez %v4110_v7  ;;  %vm4134_vm3 = vnez %v4114_v10  ;;  %2354 = vmatpush3.bf16.msra.mxu0 %v2532_v43 }
 0x103   : > { %vm3303_vm5 = vmor %vm3211_vm9, %vm642_vm4  ;;  %vm637_vm9 = vcmp.eq.s32.totalorder %v3247_v12, %v3053_v36  ;;  %v3383_v26 = vpop.permute.xlu1 %282 }
 0x104   : > { %v4125_v18 = vsel %vm3303_vm5, 4294967295, %v4124_v18  ;;  %vm509_vm7 = vmor %vm317_vm2, %vm445_vm13  ;;  %vm829_vm2 = vcmp.eq.s32.totalorder %v3247_v12, %v3055_v37  ;;  %vm449_vm13 = vcmp.eq.s32.totalorder %v3247_v12, %v3070_v44  ;;  %vm4133_vm5 = vcmp.eq.s32.totalorder %v3083_v51, %v3049_v34  ;;  %v2533_v44 = vld [vmem:[#allocation2 + $0x8] sm:$0xff]  }
 0x105   : > { %vm3319_vm11 = vmor %vm4127_vm8, %vm4126_vm1  ;;  %vm825_vm8 = vcmp.eq.s32.totalorder %v3247_v12, %v3061_v40  ;;  %2355 = vmatprep.subr.bf16.mxu0 %v2533_v44 }
 0x106   : > { %v4129_v20 = vsel %vm3319_vm11, 4294967295, %v4128_v20  ;;  %vm697_vm4 = vmor %vm505_vm6, %vm633_vm14  ;;  %vm836_vm6 = vcmp.eq.s32.totalorder %v3092_v55, %v3112_v59  ;;  %2356 = vmatpush3.bf16.msra.mxu0 %v2533_v44 }
 0x107   : > { %vm701_vm1 = vmor %vm509_vm7, %vm637_vm9  ;;  %vm325_vm7 = vcmp.eq.s32.totalorder %v3247_v12, %v3072_v31  ;;  %2357 = vmatprep.subr.bf16.mxu0 %v2534_v45 }
 0x108   : > { %vm3340_vm11 = vmor %vm4130_vm0, %vm639_vm15  ;;  %vm321_vm0 = vcmp.eq.s32.totalorder %v3247_v12, %v3066_v42  ;;  %v3402_v28 = vpop.permute.xlu1 %410 }
 0x109   : > { %vm889_vm14 = vmor %vm697_vm4, %vm825_vm8  ;;  %vm4142_vm8 = vnez %v4123_v17 }
 0x10a   : > { %vm3351_vm12 = vmor %vm4134_vm3, %vm4133_vm5  ;;  %vm834_vm3 = vcmp.eq.s32.totalorder %v3098_v57, %v3095_v56  ;;  %2358 = vmatpush3.bf16.msra.mxu0 %v2534_v45 }
 0x10b   : > { %vm893_vm15 = vmor %vm701_vm1, %vm829_vm2  ;;  %vm4141_vm2 = vnez %v4121_v0 }
 0x10c   : > { %vm3361_vm9 = vmor %vm325_vm7, %vm453_vm10  ;;  %vm838_vm10 = vcmp.eq.s32.totalorder %v3098_v57, %v3112_v59  ;;  %v3419_v29 = vpop.permute.xlu1 %413 }
 0x10d   : > { %vm2164_vm4 = vmpackc.low %vm893_vm15, %vm889_vm14  ;;  %vm4143_vm14 = vnez %v4125_v18  ;;  %vm831_vm15 = vcmp.eq.s32.totalorder %v3083_v51, %v3095_v56 }
 0x10e   : > { %vm3367_vm5 = vmor %vm321_vm0, %vm449_vm13  ;;  %2165 = vmatmul.mubr.msk.bf16.vlgmr.msra.gmra.mrb[0].mxu1 %vm2164_vm4, %v2707_v2  ;;  %vm4144_vm0 = vnez %v4129_v20 }
 0x10f   : > { %vm900_vm1 = vmor %vm4141_vm2, %vm836_vm6  ;;  %vm835_vm6 = vcmp.eq.s32.totalorder %v3083_v51, %v3112_v59  ;;  %2393 = vmatpush3.bf16.msra.mxu1 %v2532_v43 }
 0x110   : > { %vm2134_vm7 = vmpackc.low %vm900_vm1, %vm4142_vm8  ;;  %vm645_vm8 = vcmp.eq.s32.totalorder %v3247_v12, %v3049_v34  ;;  %v3461_v34 = vpop.permute.xlu0 %294  ;;  %2386 = vmatprep.subr.bf16.mxu1 %v2533_v44 }
 0x111   : > { %2135 = vmatprep.mubr.msk.bf16.mxu0 %vm2134_vm7, %v2707_v2  ;;  %vm898_vm13 = vmor %vm4143_vm14, %vm834_vm3  ;;  %vm641_vm3 = vcmp.eq.s32.totalorder %v3247_v12, %v3086_v52  ;;  %vm833_vm14 = vcmp.eq.s32.totalorder %v3247_v12, %v3095_v56  ;;  %v3430_v32 = vpop.permute.xlu1 %605  ;;  %v2535_v56 = vld [vmem:[#allocation2 + $0x18] sm:$0xff]  }
 0x112   : > { %vm902_vm4 = vmor %vm4144_vm0, %vm838_vm10  ;;  %vm456_vm0 = vcmp.eq.s32.totalorder %v3092_v55, %v3200_v8  ;;  %2359 = vmatprep.subr.bf16.mxu0 %v2535_v56 }
 0x113   : > { %vm2166_vm2 = vmpackc.low %vm902_vm4, %vm898_vm13  ;;  %vm837_vm13 = vcmp.eq.s32.totalorder %v3247_v12, %v3112_v59  ;;  %2394 = vmatpush3.bf16.msra.mxu1 %v2533_v44  ;;  %2360 = vmatpush3.bf16.msra.mxu0 %v2535_v56 }
 0x114   : > { %2167 = vmatprep.mubr.msk.bf16.mxu1 %vm2166_vm2, %v2707_v2  ;;  %vm895_vm1 = vmor %vm3340_vm11, %vm831_vm15  ;;  %vm332_vm2 = vcmp.eq.s32.totalorder %v3092_v55, %v3148_v63  ;;  %v3478_v36 = vpop.permute.xlu0 %303  ;;  %2387 = vmatprep.subr.bf16.mxu1 %v2534_v45 }
 0x115   : > { %vm899_vm7 = vmor %vm3351_vm12, %vm835_vm6  ;;  %vm328_vm12 = vcmp.eq.s32.totalorder %v3092_v55, %v3398_v27  ;;  %vm460_vm6 = vcmp.eq.s32.totalorder %v3092_v55, %v3076_v46 }
 0x116   : > { %vm2136_vm10 = vmpackc.low %vm899_vm7, %vm895_vm1  ;;  %vm648_vm1 = vcmp.eq.s32.totalorder %v3092_v55, %v3259_v13  ;;  %v3449_v33 = vpop.permute.xlu1 %794 }
 0x117   : > { %2137 = vmatmul.mubr.msk.bf16.gmra.mrb[4].mxu0 %vm2136_vm10, %v2707_v2  ;;  %vm705_vm11 = vmor %vm3367_vm5, %vm641_vm3  ;;  %vm652_vm3 = vcmp.eq.s32.totalorder %v3092_v55, %v3293_v19  ;;  %vm840_vm10 = vcmp.eq.s32.totalorder %v3092_v55, %v3058_v39  ;;  %2395 = vmatpush3.bf16.msra.mxu1 %v2534_v45 }
 0x118   : > { %vm709_vm15 = vmor %vm3361_vm9, %vm645_vm8  ;;  %v3495_v38 = vpop.permute.xlu0 %602  ;;  %2388 = vmatprep.subr.bf16.mxu1 %v2535_v56 }
 0x119   : > { %vm897_vm4 = vmor %vm705_vm11, %vm833_vm14  ;;  %vm844_vm11 = vcmp.eq.s32.totalorder %v3092_v55, %v3357_v23 }
 0x11a   : > { %vm901_vm5 = vmor %vm709_vm15, %vm837_vm13  ;;  %vm330_vm15 = vcmp.eq.s32.totalorder %v3098_v57, %v3398_v27 }
 0x11b   : > { %vm2168_vm9 = vmpackc.low %vm901_vm5, %vm897_vm4  ;;  %vm458_vm4 = vcmp.eq.s32.totalorder %v3098_v57, %v3200_v8  ;;  %v3465_v35 = vpop.permute.xlu1 %288  ;;  %2396 = vmatpush3.bf16.msra.mxu1 %v2535_v56 }
 0x11c   : > { %2169 = vmatmul.mubr.msk.bf16.gmra.mrb[4].mxu1 %vm2168_vm9, %v2707_v2  ;;  %vm520_vm8 = vmor %vm328_vm12, %vm456_vm0  ;;  %vm462_vm12 = vcmp.eq.s32.totalorder %v3098_v57, %v3076_v46  ;;  %vm334_vm0 = vcmp.eq.s32.totalorder %v3098_v57, %v3148_v63  ;;  %vm654_vm9 = vcmp.eq.s32.totalorder %v3098_v57, %v3293_v19  ;;  %v3579_v47 = vpop.permute.xlu0 %611 }
 0x11d   : > { %vm524_vm7 = vmor %vm332_vm2, %vm460_vm6  ;;  %vm650_vm2 = vcmp.eq.s32.totalorder %v3098_v57, %v3259_v13 }
 0x11e   : > { %vm712_vm14 = vmor %vm520_vm8, %vm648_vm1 }
 0x11f   : > { %vm716_vm13 = vmor %vm524_vm7, %vm652_vm3  ;;  %vm842_vm7 = vcmp.eq.s32.totalorder %v3098_v57, %v3058_v39  ;;  %v3484_v37 = vpop.permute.xlu1 %291 }
 0x120   : > { %vm904_vm5 = vmor %vm712_vm14, %vm840_vm10  ;;  %vm846_vm14 = vcmp.eq.s32.totalorder %v3098_v57, %v3357_v23  ;;  %v3644_v54 = vpop.permute.xlu0 %620 }
 0x121   : > { %vm908_vm6 = vmor %vm716_vm13, %vm844_vm11  ;;  %vm327_vm13 = vcmp.eq.s32.totalorder %v3083_v51, %v3398_v27 }
 0x122   : > { %vm2138_vm1 = vmpackc.low %vm908_vm6, %vm904_vm5  ;;  %vm455_vm5 = vcmp.eq.s32.totalorder %v3083_v51, %v3200_v8 }
 0x123   : > { %2139 = vmatprep.mubr.msk.bf16.mxu0 %vm2138_vm1, %v2707_v2  ;;  %vm522_vm3 = vmor %vm330_vm15, %vm458_vm4  ;;  %vm459_vm15 = vcmp.eq.s32.totalorder %v3083_v51, %v3076_v46  ;;  %vm331_vm4 = vcmp.eq.s32.totalorder %v3083_v51, %v3148_v63  ;;  %vm651_vm1 = vcmp.eq.s32.totalorder %v3083_v51, %v3293_v19 }
 0x124   : > { %vm526_vm8 = vmor %vm334_vm0, %vm462_vm12  ;;  %vm647_vm0 = vcmp.eq.s32.totalorder %v3083_v51, %v3259_v13  ;;  %v3499_v40 = vpop.permute.xlu1 %419  ;;  %v3663_v59 = vpop.permute.xlu0 %806 }
 0x125   : > { %vm714_vm10 = vmor %vm522_vm3, %vm650_vm2 }
 0x126   : > { %vm718_vm11 = vmor %vm526_vm8, %vm654_vm9  ;;  %vm839_vm8 = vcmp.eq.s32.totalorder %v3083_v51, %v3058_v39 }
 0x127   : > { %vm906_vm6 = vmor %vm714_vm10, %vm842_vm7  ;;  %vm843_vm10 = vcmp.eq.s32.totalorder %v3083_v51, %v3357_v23 }
 0x128   : > { %vm910_vm12 = vmor %vm718_vm11, %vm846_vm14  ;;  %vm329_vm11 = vcmp.eq.s32.totalorder %v3247_v12, %v3398_v27  ;;  %v3751_v5 = vpop.permute.xlu0 %815 }
 0x129   : > { %vm2170_vm2 = vmpackc.low %vm910_vm12, %vm906_vm6  ;;  %vm457_vm6 = vcmp.eq.s32.totalorder %v3247_v12, %v3200_v8 }
 0x12a   : > { %2171 = vmatprep.mubr.msk.bf16.mxu1 %vm2170_vm2, %v2707_v2  ;;  %vm519_vm9 = vmor %vm327_vm13, %vm455_vm5  ;;  %vm461_vm13 = vcmp.eq.s32.totalorder %v3247_v12, %v3076_v46  ;;  %vm333_vm5 = vcmp.eq.s32.totalorder %v3247_v12, %v3148_v63  ;;  %vm653_vm2 = vcmp.eq.s32.totalorder %v3247_v12, %v3293_v19  ;;  %v2539_v63 = vld [vmem:[#allocation2 + $0x38] sm:$0xff]  }
 0x12b   : > { %vm523_vm3 = vmor %vm331_vm4, %vm459_vm15  ;;  %vm649_vm4 = vcmp.eq.s32.totalorder %v3247_v12, %v3259_v13 }
 0x12c   : > { %vm711_vm7 = vmor %vm519_vm9, %vm647_vm0  ;;  %v3814_v9 = vpop.permute.xlu0 %434 }
 0x12d   : > { %vm715_vm14 = vmor %vm523_vm3, %vm651_vm1  ;;  %vm841_vm3 = vcmp.eq.s32.totalorder %v3247_v12, %v3058_v39  ;;  %v3516_v39 = vpop.permute.xlu1 %608 }
 0x12e   : > { %vm903_vm12 = vmor %vm711_vm7, %vm839_vm8  ;;  %vm845_vm7 = vcmp.eq.s32.totalorder %v3247_v12, %v3357_v23 }
 0x12f   : > { %vm907_vm15 = vmor %vm715_vm14, %vm843_vm10 }
 0x130   : > { %vm2140_vm0 = vmpackc.low %vm907_vm15, %vm903_vm12  ;;  %vm464_vm12 = vcmp.eq.s32.totalorder %v3092_v55, %v3402_v28  ;;  %vm336_vm15 = vcmp.eq.s32.totalorder %v3092_v55, %v3383_v26  ;;  %v630_v10 = vpop.permute.xlu0 %629 }
 0x131   : > { %2141 = vmatmul.mubr.msk.bf16.gmra.mrb[8].mxu0 %vm2140_vm0, %v2707_v2  ;;  %vm521_vm1 = vmor %vm329_vm11, %vm457_vm6  ;;  %vm340_vm11 = vcmp.eq.s32.totalorder %v3092_v55, %v3442_v30  ;;  %vm660_vm0 = vcmp.eq.s32.totalorder %v3092_v55, %v3430_v32  ;;  %v3535_v42 = vpop.permute.xlu1 %800 }
 0x132   : > { %vm525_vm9 = vmor %vm333_vm5, %vm461_vm13  ;;  %vm468_vm13 = vcmp.eq.s32.totalorder %v3092_v55, %v3419_v29 }
 0x133   : > { %vm713_vm8 = vmor %vm521_vm1, %vm649_vm4  ;;  %vm656_vm4 = vcmp.eq.s32.totalorder %v3092_v55, %v3495_v38 }
 0x134   : > { %vm717_vm10 = vmor %vm525_vm9, %vm653_vm2  ;;  %vm848_vm9 = vcmp.eq.s32.totalorder %v3092_v55, %v3449_v33 }
 0x135   : > { %vm905_vm14 = vmor %vm713_vm8, %vm841_vm3  ;;  %vm852_vm8 = vcmp.eq.s32.totalorder %v3092_v55, %v3063_v41  ;;  %v3552_v31 = vpop.permute.xlu1 %803 }
 0x136   : > { %vm909_vm6 = vmor %vm717_vm10, %vm845_vm7  ;;  %vm466_vm10 = vcmp.eq.s32.totalorder %v3098_v57, %v3402_v28 }
 0x137   : > { %vm2172_vm5 = vmpackc.low %vm909_vm6, %vm905_vm14  ;;  %vm342_vm6 = vcmp.eq.s32.totalorder %v3098_v57, %v3442_v30 }
 0x138   : > { %2173 = vmatmul.mubr.msk.bf16.gmra.mrb[8].mxu1 %vm2172_vm5, %v2707_v2  ;;  %vm528_vm2 = vmor %vm336_vm15, %vm464_vm12  ;;  %vm470_vm12 = vcmp.eq.s32.totalorder %v3098_v57, %v3419_v29  ;;  %vm658_vm5 = vcmp.eq.s32.totalorder %v3098_v57, %v3495_v38 }
 0x139   : > { %vm532_vm1 = vmor %vm340_vm11, %vm468_vm13  ;;  %vm338_vm13 = vcmp.eq.s32.totalorder %v3098_v57, %v3383_v26  ;;  %v3569_v46 = vpop.permute.xlu1 %297 }
 0x13a   : > { %vm720_vm3 = vmor %vm528_vm2, %vm656_vm4  ;;  %vm662_vm4 = vcmp.eq.s32.totalorder %v3098_v57, %v3430_v32 }
 0x13b   : > { %vm724_vm7 = vmor %vm532_vm1, %vm660_vm0  ;;  %vm850_vm1 = vcmp.eq.s32.totalorder %v3098_v57, %v3449_v33 }
 0x13c   : > { %vm912_vm14 = vmor %vm720_vm3, %vm848_vm9  ;;  %vm854_vm3 = vcmp.eq.s32.totalorder %v3098_v57, %v3063_v41 }
 0x13d   : > { %vm916_vm11 = vmor %vm724_vm7, %vm852_vm8  ;;  %vm463_vm7 = vcmp.eq.s32.totalorder %v3083_v51, %v3402_v28 }
 0x13e   : > { %vm2142_vm15 = vmpackc.low %vm916_vm11, %vm912_vm14  ;;  %vm339_vm11 = vcmp.eq.s32.totalorder %v3083_v51, %v3442_v30 }
 0x13f   : > { %2143 = vmatprep.mubr.msk.bf16.mxu0 %vm2142_vm15, %v2707_v2  ;;  %vm530_vm0 = vmor %vm338_vm13, %vm466_vm10  ;;  %vm467_vm10 = vcmp.eq.s32.totalorder %v3083_v51, %v3419_v29  ;;  %vm655_vm13 = vcmp.eq.s32.totalorder %v3083_v51, %v3495_v38  ;;  %vm659_vm15 = vcmp.eq.s32.totalorder %v3083_v51, %v3430_v32 }
 0x140   : > { %vm534_vm2 = vmor %vm342_vm6, %vm470_vm12  ;;  %vm335_vm12 = vcmp.eq.s32.totalorder %v3083_v51, %v3383_v26 }
 0x141   : > { %vm722_vm9 = vmor %vm530_vm0, %vm658_vm5 }
 0x142   : > { %vm726_vm8 = vmor %vm534_vm2, %vm662_vm4  ;;  %vm847_vm2 = vcmp.eq.s32.totalorder %v3083_v51, %v3449_v33 }
 0x143   : > { %vm914_vm14 = vmor %vm722_vm9, %vm850_vm1  ;;  %vm851_vm9 = vcmp.eq.s32.totalorder %v3083_v51, %v3063_v41 }
 0x144   : > { %vm918_vm6 = vmor %vm726_vm8, %vm854_vm3  ;;  %vm465_vm8 = vcmp.eq.s32.totalorder %v3247_v12, %v3402_v28 }
 0x145   : > { %vm2174_vm5 = vmpackc.low %vm918_vm6, %vm914_vm14  ;;  %vm341_vm14 = vcmp.eq.s32.totalorder %v3247_v12, %v3442_v30  ;;  %vm337_vm6 = vcmp.eq.s32.totalorder %v3247_v12, %v3383_v26 }
 0x146   : > { %2175 = vmatprep.mubr.msk.bf16.mxu1 %vm2174_vm5, %v2707_v2  ;;  %vm527_vm4 = vmor %vm335_vm12, %vm463_vm7  ;;  %vm657_vm12 = vcmp.eq.s32.totalorder %v3247_v12, %v3495_v38  ;;  %vm661_vm5 = vcmp.eq.s32.totalorder %v3247_v12, %v3430_v32 }
 0x147   : > { %vm531_vm0 = vmor %vm339_vm11, %vm467_vm10  ;;  %vm469_vm11 = vcmp.eq.s32.totalorder %v3247_v12, %v3419_v29 }
 0x148   : > { %vm719_vm1 = vmor %vm527_vm4, %vm655_vm13 }
 0x149   : > { %vm723_vm3 = vmor %vm531_vm0, %vm659_vm15  ;;  %vm849_vm0 = vcmp.eq.s32.totalorder %v3247_v12, %v3449_v33 }
 0x14a   : > { %vm911_vm7 = vmor %vm719_vm1, %vm847_vm2  ;;  %vm853_vm1 = vcmp.eq.s32.totalorder %v3247_v12, %v3063_v41  ;;  %v3585_v41 = vpop.permute.xlu1 %422 }
 0x14b   : > { %vm915_vm10 = vmor %vm723_vm3, %vm851_vm9  ;;  %vm472_vm3 = vcmp.eq.s32.totalorder %v3092_v55, %v3080_v49 }
 0x14c   : > { %vm2144_vm13 = vmpackc.low %vm915_vm10, %vm911_vm7 }
 0x14d   : > { %2145 = vmatmul.mubr.msk.bf16.gmra.mrb[12].mxu0 %vm2144_vm13, %v2707_v2  ;;  %vm529_vm15 = vmor %vm337_vm6, %vm465_vm8  ;;  %vm344_vm8 = vcmp.eq.s32.totalorder %v3092_v55, %v3465_v35  ;;  %vm664_vm6 = vcmp.eq.s32.totalorder %v3092_v55, %v3516_v39  ;;  %vm668_vm13 = vcmp.eq.s32.totalorder %v3092_v55, %v3579_v47 }
 0x14e   : > { %vm533_vm4 = vmor %vm341_vm14, %vm469_vm11  ;;  %vm476_vm11 = vcmp.eq.s32.totalorder %v3092_v55, %v3499_v40  ;;  %v3602_v48 = vpop.permute.xlu1 %614 }
 0x14f   : > { %vm721_vm2 = vmor %vm529_vm15, %vm657_vm12  ;;  %vm348_vm12 = vcmp.eq.s32.totalorder %v3092_v55, %v3484_v37 }
 0x150   : > { %vm725_vm9 = vmor %vm533_vm4, %vm661_vm5  ;;  %vm856_vm4 = vcmp.eq.s32.totalorder %v3092_v55, %v3535_v42 }
 0x151   : > { %vm913_vm7 = vmor %vm721_vm2, %vm849_vm0  ;;  %vm860_vm2 = vcmp.eq.s32.totalorder %v3092_v55, %v3552_v31 }
 0x152   : > { %vm917_vm14 = vmor %vm725_vm9, %vm853_vm1  ;;  %vm474_vm9 = vcmp.eq.s32.totalorder %v3098_v57, %v3080_v49  ;;  %v3619_v50 = vpop.permute.xlu1 %617 }
 0x153   : > { %vm2176_vm10 = vmpackc.low %vm917_vm14, %vm913_vm7  ;;  %vm346_vm7 = vcmp.eq.s32.totalorder %v3098_v57, %v3465_v35 }
 0x154   : > { %2177 = vmatmul.mubr.msk.bf16.gmra.mrb[12].mxu1 %vm2176_vm10, %v2707_v2  ;;  %vm536_vm5 = vmor %vm344_vm8, %vm472_vm3  ;;  %vm478_vm10 = vcmp.eq.s32.totalorder %v3098_v57, %v3499_v40  ;;  %vm666_vm8 = vcmp.eq.s32.totalorder %v3098_v57, %v3516_v39 }
 0x155   : > { %vm540_vm15 = vmor %vm348_vm12, %vm476_vm11  ;;  %vm670_vm12 = vcmp.eq.s32.totalorder %v3098_v57, %v3579_v47 }
 0x156   : > { %vm728_vm0 = vmor %vm536_vm5, %vm664_vm6  ;;  %vm350_vm6 = vcmp.eq.s32.totalorder %v3098_v57, %v3484_v37  ;;  %v3634_v52 = vpop.permute.xlu1 %809 }
 0x157   : > { %vm732_vm1 = vmor %vm540_vm15, %vm668_vm13  ;;  %vm858_vm15 = vcmp.eq.s32.totalorder %v3098_v57, %v3535_v42 }
 0x158   : > { %vm920_vm14 = vmor %vm728_vm0, %vm856_vm4  ;;  %vm862_vm0 = vcmp.eq.s32.totalorder %v3098_v57, %v3552_v31 }
 0x159   : > { %vm924_vm3 = vmor %vm732_vm1, %vm860_vm2  ;;  %vm471_vm1 = vcmp.eq.s32.totalorder %v3083_v51, %v3080_v49 }
 0x15a   : > { %vm2146_vm11 = vmpackc.low %vm924_vm3, %vm920_vm14  ;;  %vm343_vm14 = vcmp.eq.s32.totalorder %v3083_v51, %v3465_v35  ;;  %v3655_v58 = vpop.permute.xlu1 %300 }
 0x15b   : > { %2147 = vmatprep.mubr.msk.bf16.mxu0 %vm2146_vm11, %v2707_v2  ;;  %vm538_vm13 = vmor %vm346_vm7, %vm474_vm9  ;;  %vm475_vm9 = vcmp.eq.s32.totalorder %v3083_v51, %v3499_v40  ;;  %vm347_vm11 = vcmp.eq.s32.totalorder %v3083_v51, %v3484_v37 }
 0x15c   : > { %vm542_vm5 = vmor %vm350_vm6, %vm478_vm10  ;;  %vm663_vm10 = vcmp.eq.s32.totalorder %v3083_v51, %v3516_v39  ;;  %vm667_vm6 = vcmp.eq.s32.totalorder %v3083_v51, %v3579_v47 }
 0x15d   : > { %vm730_vm4 = vmor %vm538_vm13, %vm666_vm8 }
 0x15e   : > { %vm734_vm2 = vmor %vm542_vm5, %vm670_vm12  ;;  %vm855_vm5 = vcmp.eq.s32.totalorder %v3083_v51, %v3535_v42  ;;  %v3674_v60 = vpop.permute.xlu1 %428 }
 0x15f   : > { %vm922_vm3 = vmor %vm730_vm4, %vm858_vm15  ;;  %vm859_vm4 = vcmp.eq.s32.totalorder %v3083_v51, %v3552_v31 }
 0x160   : > { %vm926_vm7 = vmor %vm734_vm2, %vm862_vm0  ;;  %vm473_vm2 = vcmp.eq.s32.totalorder %v3247_v12, %v3080_v49  ;;  %v2536_v49 = vld [vmem:[#allocation2 + $0x20] sm:$0xff]  }
 0x161   : > { %vm2178_vm8 = vmpackc.low %vm926_vm7, %vm922_vm3  ;;  %vm345_vm3 = vcmp.eq.s32.totalorder %v3247_v12, %v3465_v35  ;;  %2361 = vmatprep.subr.bf16.mxu0 %v2536_v49  ;;  %2389 = vmatprep.subr.bf16.mxu1 %v2536_v49 }
 0x162   : > { %2179 = vmatprep.mubr.msk.bf16.mxu1 %vm2178_vm8, %v2707_v2  ;;  %vm535_vm12 = vmor %vm343_vm14, %vm471_vm1  ;;  %vm477_vm1 = vcmp.eq.s32.totalorder %v3247_v12, %v3499_v40  ;;  %vm349_vm8 = vcmp.eq.s32.totalorder %v3247_v12, %v3484_v37  ;;  %2362 = vmatpush3.bf16.msra.mxu0 %v2536_v49  ;;  %v3691_v62 = vpop.permute.xlu1 %431 }
 0x163   : > { %vm539_vm13 = vmor %vm347_vm11, %vm475_vm9  ;;  %vm665_vm9 = vcmp.eq.s32.totalorder %v3247_v12, %v3516_v39  ;;  %vm669_vm11 = vcmp.eq.s32.totalorder %v3247_v12, %v3579_v47  ;;  %2397 = vmatpush3.bf16.msra.mxu1 %v2536_v49  ;;  %2363 = vmatprep.subr.bf16.mxu0 %v2537_v61 }
 0x164   : > { %vm727_vm15 = vmor %vm535_vm12, %vm663_vm10  ;;  %2390 = vmatprep.subr.bf16.mxu1 %v2537_v61 }
 0x165   : > { %vm731_vm0 = vmor %vm539_vm13, %vm667_vm6  ;;  %vm857_vm13 = vcmp.eq.s32.totalorder %v3247_v12, %v3535_v42 }
 0x166   : > { %vm919_vm7 = vmor %vm727_vm15, %vm855_vm5  ;;  %vm861_vm15 = vcmp.eq.s32.totalorder %v3247_v12, %v3552_v31  ;;  %2364 = vmatpush3.bf16.msra.mxu0 %v2537_v61  ;;  %v3705_v3 = vpop.permute.xlu1 %623 }
 0x167   : > { %vm923_vm14 = vmor %vm731_vm0, %vm859_vm4  ;;  %vm352_vm0 = vcmp.eq.s32.totalorder %v3092_v55, %v3461_v34  ;;  %2398 = vmatpush3.bf16.msra.mxu1 %v2537_v61  ;;  %2365 = vmatprep.subr.bf16.mxu0 %v2538_v24 }
 0x168   : > { %vm2148_vm10 = vmpackc.low %vm923_vm14, %vm919_vm7  ;;  %2391 = vmatprep.subr.bf16.mxu1 %v2538_v24 }
 0x169   : > { %2149 = vmatmul.mubr.msk.bf16.gmra.mrb[16].mxu0 %vm2148_vm10, %v2707_v2  ;;  %vm537_vm6 = vmor %vm345_vm3, %vm473_vm2  ;;  %vm480_vm3 = vcmp.eq.s32.totalorder %v3092_v55, %v3585_v41  ;;  %vm484_vm10 = vcmp.eq.s32.totalorder %v3092_v55, %v3088_v53 }
 0x16a   : > { %vm541_vm12 = vmor %vm349_vm8, %vm477_vm1  ;;  %vm356_vm1 = vcmp.eq.s32.totalorder %v3092_v55, %v3569_v46  ;;  %vm676_vm8 = vcmp.eq.s32.totalorder %v3092_v55, %v3619_v50  ;;  %2366 = vmatpush3.bf16.msra.mxu0 %v2538_v24  ;;  %v3728_v4 = vpop.permute.xlu1 %812 }
 0x16b   : > { %vm729_vm5 = vmor %vm537_vm6, %vm665_vm9  ;;  %vm672_vm9 = vcmp.eq.s32.totalorder %v3092_v55, %v3602_v48  ;;  %2367 = vmatprep.subr.bf16.mxu0 %v2539_v63  ;;  %2399 = vmatpush3.bf16.msra.mxu1 %v2538_v24 }
 0x16c   : > { %vm733_vm4 = vmor %vm541_vm12, %vm669_vm11  ;;  %vm864_vm12 = vcmp.eq.s32.totalorder %v3092_v55, %v3663_v59  ;;  %2392 = vmatprep.subr.bf16.mxu1 %v2539_v63 }
 0x16d   : > { %vm921_vm2 = vmor %vm729_vm5, %vm857_vm13  ;;  %vm868_vm5 = vcmp.eq.s32.totalorder %v3092_v55, %v3634_v52 }
 0x16e   : > { %vm925_vm7 = vmor %vm733_vm4, %vm861_vm15  ;;  %vm354_vm4 = vcmp.eq.s32.totalorder %v3098_v57, %v3461_v34  ;;  %2368 = vmatpush3.bf16.msra.mxu0 %v2539_v63 }
 0x16f   : > { %vm2180_vm14 = vmpackc.low %vm925_vm7, %vm921_vm2  ;;  %vm482_vm2 = vcmp.eq.s32.totalorder %v3098_v57, %v3585_v41  ;;  %2400 = vmatpush3.bf16.msra.mxu1 %v2539_v63 }
 0x170   : > { %2181 = vmatmul.mubr.msk.bf16.gmra.mrb[16].mxu1 %vm2180_vm14, %v2707_v2  ;;  %vm544_vm11 = vmor %vm352_vm0, %vm480_vm3  ;;  %vm358_vm0 = vcmp.eq.s32.totalorder %v3098_v57, %v3569_v46 }
 0x171   : > { %vm548_vm6 = vmor %vm356_vm1, %vm484_vm10  ;;  %vm674_vm1 = vcmp.eq.s32.totalorder %v3098_v57, %v3602_v48  ;;  %vm678_vm10 = vcmp.eq.s32.totalorder %v3098_v57, %v3619_v50 }
 0x172   : > { %vm736_vm13 = vmor %vm544_vm11, %vm672_vm9  ;;  %vm486_vm9 = vcmp.eq.s32.totalorder %v3098_v57, %v3088_v53 }
 0x173   : > { %vm740_vm15 = vmor %vm548_vm6, %vm676_vm8  ;;  %vm866_vm6 = vcmp.eq.s32.totalorder %v3098_v57, %v3663_v59 }
 0x174   : > { %vm928_vm7 = vmor %vm736_vm13, %vm864_vm12  ;;  %vm870_vm13 = vcmp.eq.s32.totalorder %v3098_v57, %v3634_v52 }
 0x175   : > { %vm932_vm3 = vmor %vm740_vm15, %vm868_vm5  ;;  %vm351_vm15 = vcmp.eq.s32.totalorder %v3083_v51, %v3461_v34 }
 0x176   : > { %vm2150_vm14 = vmpackc.low %vm932_vm3, %vm928_vm7  ;;  %vm355_vm7 = vcmp.eq.s32.totalorder %v3083_v51, %v3569_v46  ;;  %vm671_vm3 = vcmp.eq.s32.totalorder %v3083_v51, %v3602_v48 }
 0x177   : > { %2151 = vmatprep.mubr.msk.bf16.mxu0 %vm2150_vm14, %v2707_v2  ;;  %vm546_vm8 = vmor %vm354_vm4, %vm482_vm2  ;;  %vm479_vm4 = vcmp.eq.s32.totalorder %v3083_v51, %v3585_v41  ;;  %vm483_vm14 = vcmp.eq.s32.totalorder %v3083_v51, %v3088_v53 }
 0x178   : > { %vm550_vm11 = vmor %vm358_vm0, %vm486_vm9  ;;  %vm675_vm9 = vcmp.eq.s32.totalorder %v3083_v51, %v3619_v50 }
 0x179   : > { %vm738_vm12 = vmor %vm546_vm8, %vm674_vm1 }
 0x17a   : > { %vm742_vm5 = vmor %vm550_vm11, %vm678_vm10  ;;  %vm863_vm11 = vcmp.eq.s32.totalorder %v3083_v51, %v3663_v59 }
 0x17b   : > { %vm930_vm2 = vmor %vm738_vm12, %vm866_vm6  ;;  %vm867_vm12 = vcmp.eq.s32.totalorder %v3083_v51, %v3634_v52 }
 0x17c   : > { %vm934_vm0 = vmor %vm742_vm5, %vm870_vm13  ;;  %vm353_vm5 = vcmp.eq.s32.totalorder %v3247_v12, %v3461_v34 }
 0x17d   : > { %vm2182_vm1 = vmpackc.low %vm934_vm0, %vm930_vm2  ;;  %vm481_vm2 = vcmp.eq.s32.totalorder %v3247_v12, %v3585_v41 }
 0x17e   : > { %2183 = vmatprep.mubr.msk.bf16.mxu1 %vm2182_vm1, %v2707_v2  ;;  %vm543_vm10 = vmor %vm351_vm15, %vm479_vm4  ;;  %vm357_vm15 = vcmp.eq.s32.totalorder %v3247_v12, %v3569_v46  ;;  %vm485_vm1 = vcmp.eq.s32.totalorder %v3247_v12, %v3088_v53  ;;  %v3743_v53 = vpop.permute.xlu1 %306 }
 0x17f   : > { %vm547_vm8 = vmor %vm355_vm7, %vm483_vm14  ;;  %vm673_vm7 = vcmp.eq.s32.totalorder %v3247_v12, %v3602_v48  ;;  %vm677_vm14 = vcmp.eq.s32.totalorder %v3247_v12, %v3619_v50 }
 0x180   : > { %vm735_vm6 = vmor %vm543_vm10, %vm671_vm3 }
 0x181   : > { %vm739_vm13 = vmor %vm547_vm8, %vm675_vm9  ;;  %vm865_vm8 = vcmp.eq.s32.totalorder %v3247_v12, %v3663_v59 }
 0x182   : > { %vm927_vm0 = vmor %vm735_vm6, %vm863_vm11  ;;  %vm869_vm6 = vcmp.eq.s32.totalorder %v3247_v12, %v3634_v52  ;;  %v3762_v6 = vpop.permute.xlu1 %309 }
 0x183   : > { %vm931_vm4 = vmor %vm739_vm13, %vm867_vm12 }
 0x184   : > { %vm2152_vm3 = vmpackc.low %vm931_vm4, %vm927_vm0  ;;  %vm488_vm0 = vcmp.eq.s32.totalorder %v3092_v55, %v3674_v60 }
 0x185   : > { %2153 = vmatmul.mubr.msk.bf16.gmra.mrb[20].mxu0 %vm2152_vm3, %v2707_v2  ;;  %vm545_vm9 = vmor %vm353_vm5, %vm481_vm2  ;;  %vm492_vm3 = vcmp.eq.s32.totalorder %v3092_v55, %v3691_v62  ;;  %vm680_vm5 = vcmp.eq.s32.totalorder %v3092_v55, %v3644_v54 }
 0x186   : > { %vm549_vm10 = vmor %vm357_vm15, %vm485_vm1  ;;  %vm360_vm15 = vcmp.eq.s32.totalorder %v3092_v55, %v3655_v58  ;;  %vm684_vm1 = vcmp.eq.s32.totalorder %v3092_v55, %v3705_v3  ;;  %v3781_v7 = vpop.permute.xlu1 %437 }
 0x187   : > { %vm737_vm11 = vmor %vm545_vm9, %vm673_vm7  ;;  %vm364_vm7 = vcmp.eq.s32.totalorder %v3092_v55, %v3478_v36 }
 0x188   : > { %vm741_vm12 = vmor %vm549_vm10, %vm677_vm14  ;;  %vm872_vm10 = vcmp.eq.s32.totalorder %v3092_v55, %v3728_v4 }
 0x189   : > { %vm929_vm13 = vmor %vm737_vm11, %vm865_vm8  ;;  %vm876_vm11 = vcmp.eq.s32.totalorder %v3092_v55, %v3751_v5 }
 0x18a   : > { %vm933_vm4 = vmor %vm741_vm12, %vm869_vm6  ;;  %vm490_vm12 = vcmp.eq.s32.totalorder %v3098_v57, %v3674_v60  ;;  %v3798_v8 = vpop.permute.xlu1 %626 }
 0x18b   : > { %vm2184_vm2 = vmpackc.low %vm933_vm4, %vm929_vm13  ;;  %vm494_vm4 = vcmp.eq.s32.totalorder %v3098_v57, %v3691_v62 }
 0x18c   : > { %2185 = vmatmul.mubr.msk.bf16.gmra.mrb[20].mxu1 %vm2184_vm2, %v2707_v2  ;;  %vm552_vm14 = vmor %vm360_vm15, %vm488_vm0  ;;  %vm682_vm0 = vcmp.eq.s32.totalorder %v3098_v57, %v3644_v54  ;;  %vm366_vm15 = vcmp.eq.s32.totalorder %v3098_v57, %v3478_v36 }
 0x18d   : > { %vm556_vm9 = vmor %vm364_vm7, %vm492_vm3  ;;  %vm362_vm3 = vcmp.eq.s32.totalorder %v3098_v57, %v3655_v58  ;;  %vm686_vm7 = vcmp.eq.s32.totalorder %v3098_v57, %v3705_v3 }
 0x18e   : > { %vm744_vm8 = vmor %vm552_vm14, %vm680_vm5  ;;  %v3817_v1 = vpop.permute.xlu1 %818 }
 0x18f   : > { %vm748_vm6 = vmor %vm556_vm9, %vm684_vm1  ;;  %vm874_vm9 = vcmp.eq.s32.totalorder %v3098_v57, %v3728_v4 }
 0x190   : > { %vm936_vm13 = vmor %vm744_vm8, %vm872_vm10  ;;  %vm878_vm8 = vcmp.eq.s32.totalorder %v3098_v57, %v3751_v5 }
 0x191   : > { %vm940_vm2 = vmor %vm748_vm6, %vm876_vm11  ;;  %vm487_vm6 = vcmp.eq.s32.totalorder %v3083_v51, %v3674_v60 }
 0x192   : > { %vm2154_vm5 = vmpackc.low %vm940_vm2, %vm936_vm13  ;;  %vm491_vm2 = vcmp.eq.s32.totalorder %v3083_v51, %v3691_v62  ;;  %v822_v11 = vpop.permute.xlu1 %821 }
 0x193   : > { %2155 = vmatprep.mubr.msk.bf16.mxu0 %vm2154_vm5, %v2707_v2  ;;  %vm554_vm1 = vmor %vm362_vm3, %vm490_vm12  ;;  %vm679_vm12 = vcmp.eq.s32.totalorder %v3083_v51, %v3644_v54  ;;  %vm363_vm3 = vcmp.eq.s32.totalorder %v3083_v51, %v3478_v36 }
 0x194   : > { %vm558_vm14 = vmor %vm366_vm15, %vm494_vm4  ;;  %vm359_vm4 = vcmp.eq.s32.totalorder %v3083_v51, %v3655_v58  ;;  %vm683_vm15 = vcmp.eq.s32.totalorder %v3083_v51, %v3705_v3 }
 0x195   : > { %vm746_vm10 = vmor %vm554_vm1, %vm682_vm0 }
 0x196   : > { %vm750_vm11 = vmor %vm558_vm14, %vm686_vm7  ;;  %vm871_vm14 = vcmp.eq.s32.totalorder %v3083_v51, %v3728_v4 }
 0x197   : > { %vm938_vm13 = vmor %vm746_vm10, %vm874_vm9  ;;  %vm875_vm10 = vcmp.eq.s32.totalorder %v3083_v51, %v3751_v5 }
 0x198   : > { %vm942_vm5 = vmor %vm750_vm11, %vm878_vm8  ;;  %vm489_vm11 = vcmp.eq.s32.totalorder %v3247_v12, %v3674_v60 }
 0x199   : > { %vm2186_vm0 = vmpackc.low %vm942_vm5, %vm938_vm13  ;;  %vm493_vm5 = vcmp.eq.s32.totalorder %v3247_v12, %v3691_v62 }
 0x19a   : > { %2187 = vmatprep.mubr.msk.bf16.mxu1 %vm2186_vm0, %v2707_v2  ;;  %vm551_vm7 = vmor %vm359_vm4, %vm487_vm6  ;;  %vm681_vm6 = vcmp.eq.s32.totalorder %v3247_v12, %v3644_v54 }
 0x19b   : > { %vm555_vm1 = vmor %vm363_vm3, %vm491_vm2  ;;  %vm361_vm2 = vcmp.eq.s32.totalorder %v3247_v12, %v3655_v58  ;;  %vm685_vm3 = vcmp.eq.s32.totalorder %v3247_v12, %v3705_v3 }
 0x19c   : > { %vm743_vm9 = vmor %vm551_vm7, %vm679_vm12  ;;  %vm365_vm12 = vcmp.eq.s32.totalorder %v3247_v12, %v3478_v36 }
 0x19d   : > { %vm747_vm8 = vmor %vm555_vm1, %vm683_vm15  ;;  %vm873_vm1 = vcmp.eq.s32.totalorder %v3247_v12, %v3728_v4 }
 0x19e   : > { %vm935_vm13 = vmor %vm743_vm9, %vm871_vm14  ;;  %vm877_vm9 = vcmp.eq.s32.totalorder %v3247_v12, %v3751_v5 }
 0x19f   : > { %vm939_vm0 = vmor %vm747_vm8, %vm875_vm10  ;;  %vm496_vm8 = vcmp.eq.s32.totalorder %v3092_v55, %v3814_v9 }
 0x1a0   : > { %vm2156_vm4 = vmpackc.low %vm939_vm0, %vm935_vm13  ;;  %vm368_vm0 = vcmp.eq.s32.totalorder %v3092_v55, %v3743_v53 }
 0x1a1   : > { %2157 = vmatmul.mubr.msk.bf16.gmra.mrb[24].mxu0 %vm2156_vm4, %v2707_v2  ;;  %vm553_vm15 = vmor %vm361_vm2, %vm489_vm11  ;;  %vm372_vm4 = vcmp.eq.s32.totalorder %v3092_v55, %v3762_v6 }
 0x1a2   : > { %vm557_vm7 = vmor %vm365_vm12, %vm493_vm5  ;;  %vm500_vm5 = vcmp.eq.s32.totalorder %v3092_v55, %v3781_v7  ;;  %vm692_vm12 = vcmp.eq.s32.totalorder %v3092_v55, %v630_v10 }
 0x1a3   : > { %vm745_vm14 = vmor %vm553_vm15, %vm681_vm6  ;;  %vm688_vm6 = vcmp.eq.s32.totalorder %v3092_v55, %v3798_v8 }
 0x1a4   : > { %vm749_vm10 = vmor %vm557_vm7, %vm685_vm3  ;;  %vm880_vm7 = vcmp.eq.s32.totalorder %v3092_v55, %v3817_v1 }
 0x1a5   : > { %vm937_vm13 = vmor %vm745_vm14, %vm873_vm1  ;;  %vm884_vm14 = vcmp.eq.s32.totalorder %v3092_v55, %v822_v11 }
 0x1a6   : > { %vm941_vm11 = vmor %vm749_vm10, %vm877_vm9  ;;  %vm498_vm10 = vcmp.eq.s32.totalorder %v3098_v57, %v3814_v9 }
 0x1a7   : > { %vm2188_vm2 = vmpackc.low %vm941_vm11, %vm937_vm13  ;;  %vm370_vm13 = vcmp.eq.s32.totalorder %v3098_v57, %v3743_v53 }
 0x1a8   : > { %2189 = vmatmul.mubr.msk.bf16.gmra.mrb[24].mxu1 %vm2188_vm2, %v2707_v2  ;;  %vm560_vm3 = vmor %vm368_vm0, %vm496_vm8  ;;  %vm502_vm2 = vcmp.eq.s32.totalorder %v3098_v57, %v3781_v7  ;;  %vm690_vm8 = vcmp.eq.s32.totalorder %v3098_v57, %v3798_v8 }
 0x1a9   : > { %vm564_vm15 = vmor %vm372_vm4, %vm500_vm5  ;;  %vm694_vm4 = vcmp.eq.s32.totalorder %v3098_v57, %v630_v10 }
 0x1aa   : > { %vm752_vm1 = vmor %vm560_vm3, %vm688_vm6  ;;  %vm374_vm6 = vcmp.eq.s32.totalorder %v3098_v57, %v3762_v6 }
 0x1ab   : > { %vm756_vm9 = vmor %vm564_vm15, %vm692_vm12  ;;  %vm882_vm15 = vcmp.eq.s32.totalorder %v3098_v57, %v3817_v1 }
 0x1ac   : > { %vm944_vm11 = vmor %vm752_vm1, %vm880_vm7  ;;  %vm886_vm1 = vcmp.eq.s32.totalorder %v3098_v57, %v822_v11 }
 0x1ad   : > { %vm948_vm0 = vmor %vm756_vm9, %vm884_vm14  ;;  %vm495_vm9 = vcmp.eq.s32.totalorder %v3083_v51, %v3814_v9 }
 0x1ae   : > { %vm2158_vm5 = vmpackc.low %vm948_vm0, %vm944_vm11  ;;  %vm367_vm11 = vcmp.eq.s32.totalorder %v3083_v51, %v3743_v53 }
 0x1af   : > { %2159 = vmatprep.mubr.msk.bf16.mxu0 %vm2158_vm5, %v2707_v2  ;;  %vm562_vm12 = vmor %vm370_vm13, %vm498_vm10  ;;  %vm499_vm5 = vcmp.eq.s32.totalorder %v3083_v51, %v3781_v7  ;;  %vm687_vm13 = vcmp.eq.s32.totalorder %v3083_v51, %v3798_v8 }
 0x1b0   : > { %vm566_vm3 = vmor %vm374_vm6, %vm502_vm2  ;;  %vm691_vm6 = vcmp.eq.s32.totalorder %v3083_v51, %v630_v10 }
 0x1b1   : > { %vm754_vm7 = vmor %vm562_vm12, %vm690_vm8  ;;  %vm371_vm8 = vcmp.eq.s32.totalorder %v3083_v51, %v3762_v6 }
 0x1b2   : > { %vm758_vm14 = vmor %vm566_vm3, %vm694_vm4  ;;  %vm879_vm3 = vcmp.eq.s32.totalorder %v3083_v51, %v3817_v1 }
 0x1b3   : > { %vm946_vm0 = vmor %vm754_vm7, %vm882_vm15  ;;  %vm883_vm7 = vcmp.eq.s32.totalorder %v3083_v51, %v822_v11 }
 0x1b4   : > { %vm950_vm10 = vmor %vm758_vm14, %vm886_vm1  ;;  %vm497_vm14 = vcmp.eq.s32.totalorder %v3247_v12, %v3814_v9 }
 0x1b5   : > { %vm2190_vm2 = vmpackc.low %vm950_vm10, %vm946_vm0  ;;  %vm369_vm0 = vcmp.eq.s32.totalorder %v3247_v12, %v3743_v53 }
 0x1b6   : > { %2191 = vmatprep.mubr.msk.bf16.mxu1 %vm2190_vm2, %v2707_v2  ;;  %vm559_vm4 = vmor %vm367_vm11, %vm495_vm9  ;;  %vm501_vm2 = vcmp.eq.s32.totalorder %v3247_v12, %v3781_v7  ;;  %vm689_vm11 = vcmp.eq.s32.totalorder %v3247_v12, %v3798_v8 }
 0x1b7   : > { %vm563_vm12 = vmor %vm371_vm8, %vm499_vm5  ;;  %vm693_vm8 = vcmp.eq.s32.totalorder %v3247_v12, %v630_v10 }
 0x1b8   : > { %vm751_vm15 = vmor %vm559_vm4, %vm687_vm13  ;;  %vm373_vm13 = vcmp.eq.s32.totalorder %v3247_v12, %v3762_v6 }
 0x1b9   : > { %vm755_vm1 = vmor %vm563_vm12, %vm691_vm6  ;;  %vm881_vm12 = vcmp.eq.s32.totalorder %v3247_v12, %v3817_v1 }
 0x1ba   : > { %vm943_vm10 = vmor %vm751_vm15, %vm879_vm3  ;;  %vm885_vm15 = vcmp.eq.s32.totalorder %v3247_v12, %v822_v11 }
 0x1bb   : > { %vm947_vm9 = vmor %vm755_vm1, %vm883_vm7 }
 0x1bc   : > { %vm2160_vm5 = vmpackc.low %vm947_vm9, %vm943_vm10 }
 0x1bd   : > { %2161 = vmatmul.mubr.msk.bf16.gmra.mrb[28].mxu0 %vm2160_vm5, %v2707_v2  ;;  %vm561_vm6 = vmor %vm369_vm0, %vm497_vm14 }
 0x1be   : > { %vm565_vm4 = vmor %vm373_vm13, %vm501_vm2 }
 0x1bf   : > { %vm753_vm3 = vmor %vm561_vm6, %vm689_vm11 }
 0x1c0   : > { %vm757_vm7 = vmor %vm565_vm4, %vm693_vm8 }
 0x1c1   : > { %vm945_vm1 = vmor %vm753_vm3, %vm881_vm12 }
 0x1c2   : > { %vm949_vm9 = vmor %vm757_vm7, %vm885_vm15 }
 0x1c3   : > { %vm2192_vm10 = vmpackc.low %vm949_vm9, %vm945_vm1 }
 0x1c4   : > { %2193 = vmatmul.mubr.msk.bf16.gmra.mrb[28].mxu1 %vm2192_vm10, %v2707_v2 }
 0x1d4   : > { %v2225_v51 = vpop.f32.mrb[0].mxu0 }
 0x1d5   : > { %v2226_v55 = vpop.f32.mrb[1].mxu0 }
 0x1d6   : > { %v2227_v57 = vadd.f32 %v2226_v55, %v2225_v51  ;;  %v2228_v13 = vpop.f32.mrb[2].mxu0 }
 0x1d7   : > { %v2229_v0 = vpop.f32.mrb[3].mxu0 }
 0x1d8   : > { %v2230_v17 = vadd.f32 %v2229_v0, %v2228_v13  ;;  %v1409_v12 = vadd.f32 %v2227_v57, %v3887_v16 }
 0x1da   : > { %v1412_v15 = vadd.f32 %v2230_v17, %v3887_v16 }
 0x1e1   : > { %v2289_v19 = vpop.f32.mrb[0].mxu1 }
 0x1e2   : > { %v2290_v18 = vpop.f32.mrb[1].mxu1 }
 0x1e3   : > { %v2291_v20 = vadd.f32 %v2290_v18, %v2289_v19  ;;  %v2292_v21 = vpop.f32.mrb[2].mxu1 }
 0x1e4   : > { %v2293_v2 = vpop.f32.mrb[3].mxu1 }
 0x1e5   : > { %v1506_v22 = vadd.f32 %v2291_v20, %v1409_v12  ;;  %v2294_v23 = vadd.f32 %v2293_v2, %v2292_v21 }
 0x1e7   : > { %v1509_v14 = vadd.f32 %v2294_v23, %v1412_v15  ;;  %v1568_v25 = vmax.f32 %v1506_v22, 0.0 }
 0x1e9   : > { %v1569_v26 = vmax.f32 %v1509_v14, 0.0 }
 0x1ea   : > { %v2231_v27 = vpop.f32.mrb[4].mxu0 }
 0x1eb   : > { %v2232_v28 = vpop.f32.mrb[5].mxu0  ;;  %v1584_v30 = vpack.c.bf16 %v1569_v26, %v1568_v25 }
 0x1ec   : > { %v2233_v29 = vadd.f32 %v2232_v28, %v2231_v27  ;;  %v2234_v32 = vpop.f32.mrb[6].mxu0 }
 0x1ed   : > { %v2235_v33 = vpop.f32.mrb[7].mxu0  ;;  %2369 = vmatprep.mubr.bf16.mxu0 %v1584_v30 }
 0x1ee   : > { %v2236_v34 = vadd.f32 %v2235_v33, %v2234_v32  ;;  %v1417_v36 = vadd.f32 %v2233_v29, %v3887_v16 }
 0x1ef   : > { %v2295_v35 = vpop.f32.mrb[4].mxu1 }
 0x1f0   : > { %v2296_v37 = vpop.f32.mrb[5].mxu1  ;;  %v1420_v39 = vadd.f32 %v2236_v34, %v3887_v16 }
 0x1f1   : > { %v2297_v38 = vadd.f32 %v2296_v37, %v2295_v35  ;;  %v2298_v40 = vpop.f32.mrb[6].mxu1 }
 0x1f2   : > { %v2299_v42 = vpop.f32.mrb[7].mxu1 }
 0x1f3   : > { %v1514_v43 = vadd.f32 %v2297_v38, %v1417_v36  ;;  %v2300_v44 = vadd.f32 %v2299_v42, %v2298_v40 }
 0x1f5   : > { %v1517_v31 = vadd.f32 %v2300_v44, %v1420_v39  ;;  %v1570_v45 = vmax.f32 %v1514_v43, 0.0 }
 0x1f7   : > { %v1571_v46 = vmax.f32 %v1517_v31, 0.0 }
 0x1f9   : > { %v1585_v47 = vpack.c.bf16 %v1571_v46, %v1570_v45 }
 0x1fb   : > { %2370 = vmatmul.mubr.bf16.vlgmr.msra.gmra.mrb[32].mxu0 %v1585_v47 }
 0x204   : > { %v2237_v41 = vpop.f32.mrb[8].mxu0 }
 0x205   : > { %v2238_v48 = vpop.f32.mrb[9].mxu0 }
 0x206   : > { %v2239_v50 = vadd.f32 %v2238_v48, %v2237_v41  ;;  %v2240_v52 = vpop.f32.mrb[10].mxu0 }
 0x207   : > { %v2241_v54 = vpop.f32.mrb[11].mxu0 }
 0x208   : > { %v2242_v56 = vadd.f32 %v2241_v54, %v2240_v52  ;;  %v1425_v58 = vadd.f32 %v2239_v50, %v3887_v16 }
 0x20a   : > { %v1428_v62 = vadd.f32 %v2242_v56, %v3887_v16 }
 0x20b   : > { %v2301_v49 = vpop.f32.mrb[8].mxu1 }
 0x20c   : > { %v2302_v59 = vpop.f32.mrb[9].mxu1 }
 0x20d   : > { %v2303_v60 = vadd.f32 %v2302_v59, %v2301_v49  ;;  %v2304_v61 = vpop.f32.mrb[10].mxu1 }
 0x20e   : > { %v2305_v24 = vpop.f32.mrb[11].mxu1 }
 0x20f   : > { %v1522_v63 = vadd.f32 %v2303_v60, %v1425_v58  ;;  %v2306_v3 = vadd.f32 %v2305_v24, %v2304_v61 }
 0x211   : > { %v1525_v4 = vadd.f32 %v2306_v3, %v1428_v62  ;;  %v1572_v53 = vmax.f32 %v1522_v63, 0.0 }
 0x213   : > { %v1573_v5 = vmax.f32 %v1525_v4, 0.0 }
 0x215   : > { %v1586_v6 = vpack.c.bf16 %v1573_v5, %v1572_v53 }
 0x217   : > { %2373 = vmatprep.mubr.bf16.mxu0 %v1586_v6 }
 0x220   : > { %v2243_v7 = vpop.f32.mrb[12].mxu0 }
 0x221   : > { %v2244_v8 = vpop.f32.mrb[13].mxu0 }
 0x222   : > { %v2245_v9 = vadd.f32 %v2244_v8, %v2243_v7  ;;  %v2246_v1 = vpop.f32.mrb[14].mxu0 }
 0x223   : > { %v2247_v10 = vpop.f32.mrb[15].mxu0 }
 0x224   : > { %v2248_v11 = vadd.f32 %v2247_v10, %v2246_v1  ;;  %v1433_v55 = vadd.f32 %v2245_v9, %v3887_v16 }
 0x226   : > { %v1436_v17 = vadd.f32 %v2248_v11, %v3887_v16 }
 0x227   : > { %v2307_v51 = vpop.f32.mrb[12].mxu1 }
 0x228   : > { %v2308_v57 = vpop.f32.mrb[13].mxu1 }
 0x229   : > { %v2309_v13 = vadd.f32 %v2308_v57, %v2307_v51  ;;  %v2310_v0 = vpop.f32.mrb[14].mxu1 }
 0x22a   : > { %v2311_v19 = vpop.f32.mrb[15].mxu1 }
 0x22b   : > { %v1530_v12 = vadd.f32 %v2309_v13, %v1433_v55  ;;  %v2312_v18 = vadd.f32 %v2311_v19, %v2310_v0 }
 0x22d   : > { %v1533_v20 = vadd.f32 %v2312_v18, %v1436_v17  ;;  %v1574_v21 = vmax.f32 %v1530_v12, 0.0 }
 0x22f   : > { %v1575_v15 = vmax.f32 %v1533_v20, 0.0 }
 0x231   : > { %v1587_v2 = vpack.c.bf16 %v1575_v15, %v1574_v21 }
 0x233   : > { %2374 = vmatmul.mubr.bf16.gmra.mrb[36].mxu0 %v1587_v2 }
 0x23c   : > { %v2249_v22 = vpop.f32.mrb[16].mxu0 }
 0x23d   : > { %v2250_v23 = vpop.f32.mrb[17].mxu0 }
 0x23e   : > { %v2251_v14 = vadd.f32 %v2250_v23, %v2249_v22  ;;  %v2252_v25 = vpop.f32.mrb[18].mxu0 }
 0x23f   : > { %v2253_v26 = vpop.f32.mrb[19].mxu0 }
 0x240   : > { %v2254_v27 = vadd.f32 %v2253_v26, %v2252_v25  ;;  %v1441_v29 = vadd.f32 %v2251_v14, %v3887_v16 }
 0x242   : > { %v1444_v34 = vadd.f32 %v2254_v27, %v3887_v16 }
 0x243   : > { %v2313_v28 = vpop.f32.mrb[16].mxu1 }
 0x244   : > { %v2314_v32 = vpop.f32.mrb[17].mxu1 }
 0x245   : > { %v2315_v30 = vadd.f32 %v2314_v32, %v2313_v28  ;;  %v2316_v33 = vpop.f32.mrb[18].mxu1 }
 0x246   : > { %v2317_v35 = vpop.f32.mrb[19].mxu1 }
 0x247   : > { %v1538_v36 = vadd.f32 %v2315_v30, %v1441_v29  ;;  %v2318_v37 = vadd.f32 %v2317_v35, %v2316_v33 }
 0x249   : > { %v1541_v38 = vadd.f32 %v2318_v37, %v1444_v34  ;;  %v1576_v40 = vmax.f32 %v1538_v36, 0.0  ;;  %v2194_v36 = vld [vmem:[%s4085_s4] ss:$0 sm:$0xff] }
 0x24b   : > { %v1577_v39 = vmax.f32 %v1541_v38, 0.0 }
 0x24d   : > { %v1588_v42 = vpack.c.bf16 %v1577_v39, %v1576_v40 }
 0x24f   : > { %2377 = vmatprep.mubr.bf16.mxu1 %v1588_v42 }
 0x258   : > { %v2255_v43 = vpop.f32.mrb[20].mxu0 }
 0x259   : > { %v2256_v44 = vpop.f32.mrb[21].mxu0 }
 0x25a   : > { %v2257_v31 = vadd.f32 %v2256_v44, %v2255_v43  ;;  %v2258_v45 = vpop.f32.mrb[22].mxu0 }
 0x25b   : > { %v2259_v46 = vpop.f32.mrb[23].mxu0 }
 0x25c   : > { %v2260_v47 = vadd.f32 %v2259_v46, %v2258_v45  ;;  %v1449_v48 = vadd.f32 %v2257_v31, %v3887_v16 }
 0x25e   : > { %v1452_v56 = vadd.f32 %v2260_v47, %v3887_v16 }
 0x25f   : > { %v2319_v41 = vpop.f32.mrb[20].mxu1 }
 0x260   : > { %v2320_v50 = vpop.f32.mrb[21].mxu1 }
 0x261   : > { %v2321_v52 = vadd.f32 %v2320_v50, %v2319_v41  ;;  %v2322_v54 = vpop.f32.mrb[22].mxu1 }
 0x262   : > { %v2323_v49 = vpop.f32.mrb[23].mxu1 }
 0x263   : > { %v1546_v58 = vadd.f32 %v2321_v52, %v1449_v48  ;;  %v2324_v59 = vadd.f32 %v2323_v49, %v2322_v54 }
 0x265   : > { %v1549_v60 = vadd.f32 %v2324_v59, %v1452_v56  ;;  %v1578_v61 = vmax.f32 %v1546_v58, 0.0 }
 0x267   : > { %v1579_v62 = vmax.f32 %v1549_v60, 0.0 }
 0x269   : > { %v1589_v24 = vpack.c.bf16 %v1579_v62, %v1578_v61 }
 0x26b   : > { %2378 = vmatmul.mubr.bf16.vlgmr.msra.gmra.mrb[32].mxu1 %v1589_v24 }
 0x274   : > { %v2261_v63 = vpop.f32.mrb[24].mxu0 }
 0x275   : > { %v2262_v3 = vpop.f32.mrb[25].mxu0 }
 0x276   : > { %v2263_v4 = vadd.f32 %v2262_v3, %v2261_v63  ;;  %v2264_v53 = vpop.f32.mrb[26].mxu0 }
 0x277   : > { %v2265_v5 = vpop.f32.mrb[27].mxu0 }
 0x278   : > { %v2266_v6 = vadd.f32 %v2265_v5, %v2264_v53  ;;  %v1457_v8 = vadd.f32 %v2263_v4, %v3887_v16 }
 0x27a   : > { %v1460_v11 = vadd.f32 %v2266_v6, %v3887_v16 }
 0x27b   : > { %v2325_v7 = vpop.f32.mrb[24].mxu1 }
 0x27c   : > { %v2326_v9 = vpop.f32.mrb[25].mxu1 }
 0x27d   : > { %v2327_v1 = vadd.f32 %v2326_v9, %v2325_v7  ;;  %v2328_v10 = vpop.f32.mrb[26].mxu1 }
 0x27e   : > { %v2329_v51 = vpop.f32.mrb[27].mxu1 }
 0x27f   : > { %v1554_v55 = vadd.f32 %v2327_v1, %v1457_v8  ;;  %v2330_v57 = vadd.f32 %v2329_v51, %v2328_v10 }
 0x281   : > { %v1557_v13 = vadd.f32 %v2330_v57, %v1460_v11  ;;  %v1580_v0 = vmax.f32 %v1554_v55, 0.0 }
 0x283   : > { %v1581_v17 = vmax.f32 %v1557_v13, 0.0 }
 0x285   : > { %v1590_v19 = vpack.c.bf16 %v1581_v17, %v1580_v0 }
 0x287   : > { %2381 = vmatprep.mubr.bf16.mxu1 %v1590_v19 }
 0x290   : > { %v2267_v12 = vpop.f32.mrb[28].mxu0 }
 0x291   : > { %v2268_v18 = vpop.f32.mrb[29].mxu0 }
 0x292   : > { %v2269_v20 = vadd.f32 %v2268_v18, %v2267_v12  ;;  %v2270_v21 = vpop.f32.mrb[30].mxu0 }
 0x293   : > { %v2271_v15 = vpop.f32.mrb[31].mxu0 }
 0x294   : > { %v2272_v2 = vadd.f32 %v2271_v15, %v2270_v21  ;;  %v1465_v23 = vadd.f32 %v2269_v20, %v3887_v16 }
 0x296   : > { %v1468_v27 = vadd.f32 %v2272_v2, %v3887_v16 }
 0x297   : > { %v2331_v22 = vpop.f32.mrb[28].mxu1 }
 0x298   : > { %v2332_v14 = vpop.f32.mrb[29].mxu1 }
 0x299   : > { %v2333_v25 = vadd.f32 %v2332_v14, %v2331_v22  ;;  %v2334_v26 = vpop.f32.mrb[30].mxu1 }
 0x29a   : > { %v2335_v28 = vpop.f32.mrb[31].mxu1 }
 0x29b   : > { %v1562_v29 = vadd.f32 %v2333_v25, %v1465_v23  ;;  %v2336_v32 = vadd.f32 %v2335_v28, %v2334_v26 }
 0x29d   : > { %v1565_v30 = vadd.f32 %v2336_v32, %v1468_v27  ;;  %v1582_v33 = vmax.f32 %v1562_v29, 0.0 }
 0x29f   : > { %v1583_v34 = vmax.f32 %v1565_v30, 0.0 }
 0x2a1   : > { %v1591_v35 = vpack.c.bf16 %v1583_v34, %v1582_v33 }
 0x2a3   : > { %2382 = vmatmul.mubr.bf16.gmra.mrb[36].mxu1 %v1591_v35 }
 0x2ce   : > { %v2371_v37 = vpop.f32.mrb[32].mxu0 }
 0x2cf   : > { %v1706_v38 = vadd.f32 %v2371_v37, %v2194_v36  ;;  %v1697_v40 = vpop.f32.mrb[33].mxu0 }
 0x2d0   : > { %v2372_v39 = vpop.f32.mrb[34].mxu0  ;;  %v1698_v16 = vadd.f32 %v2194_v36, %v1697_v40 }
 0x2d1   : > { %1764 = vmax.xlane.f32.xlu0 %v1706_v38  ;;  %v1700_v42 = vpop.f32.mrb[35].mxu0  ;;  %v1709_v44 = vadd.f32 %v2372_v39, %v2194_v36 }
 0x2d2   : > { %v1701_v43 = vadd.f32 %v2194_v36, %v1700_v42 }
 0x2d4   : > { %1762 = vmax.xlane.f32.xlu1 %v1701_v43 }
 0x2d5   : > { %1760 = vmax.xlane.f32.xlu0 %v1698_v16 }
 0x2d9   : > { %1766 = vmax.xlane.f32.xlu0 %v1709_v44 }
 0x306   : > { %v2375_v31 = vpop.f32.mrb[36].mxu0 }
 0x307   : > { %v1722_v45 = vadd.f32 %v2375_v31, %v2194_v36  ;;  %v1713_v46 = vpop.f32.mrb[37].mxu0 }
 0x308   : > { %v2376_v47 = vpop.f32.mrb[38].mxu0  ;;  %v1714_v50 = vadd.f32 %v2194_v36, %v1713_v46 }
 0x309   : > { %v1725_v41 = vadd.f32 %v2376_v47, %v2194_v36  ;;  %v1716_v48 = vpop.f32.mrb[39].mxu0  ;;  %1772 = vmax.xlane.f32.xlu1 %v1722_v45 }
 0x30a   : > { %v3908_v52 = vadd.f32 %v2194_v36, %v1716_v48 }
 0x30b   : > { %1774 = vmax.xlane.f32.xlu0 %v1725_v41 }
 0x30d   : > { %1768 = vmax.xlane.f32.xlu1 %v1714_v50 }
 0x30f   : > { %1770 = vmax.xlane.f32.xlu0 %v3908_v52 }
 0x33e   : > { %v2379_v54 = vpop.f32.mrb[32].mxu1 }
 0x33f   : > { %v3911_v56 = vadd.f32 %v2379_v54, %v2194_v36  ;;  %v1729_v49 = vpop.f32.mrb[33].mxu1 }
 0x340   : > { %v2380_v58 = vpop.f32.mrb[34].mxu1  ;;  %v3916_v61 = vadd.f32 %v2194_v36, %v1729_v49 }
 0x341   : > { %v3913_v59 = vadd.f32 %v2380_v58, %v2194_v36  ;;  %v1732_v60 = vpop.f32.mrb[35].mxu1  ;;  %1780 = vmax.xlane.f32.xlu1 %v3911_v56 }
 0x342   : > { %v3919_v62 = vadd.f32 %v2194_v36, %v1732_v60 }
 0x343   : > { %1782 = vmax.xlane.f32.xlu0 %v3913_v59 }
 0x345   : > { %1776 = vmax.xlane.f32.xlu1 %v3916_v61 }
 0x347   : > { %1778 = vmax.xlane.f32.xlu0 %v3919_v62 }
 0x35e   : > { %v1765_v24 = vpop.xlane.xlu0 %1764 }
 0x35f   : > { %v3923_v4 = vsub.f32 %v1706_v38, %v1765_v24 }
 0x361   : > { %v1812_v5 = vmul.f32 1.442695, %v3923_v4  ;;  %v1763_v7 = vpop.xlane.xlu1 %1762 }
 0x362   : > { %v1761_v63 = vpop.xlane.xlu0 %1760  ;;  %v3931_v9 = vsub.f32 %v1701_v43, %v1763_v7 }
 0x363   : > { %v3928_v6 = vsub.f32 %v1698_v16, %v1761_v63  ;;  %2540 = vpow2.f32 %v1812_v5 }
 0x364   : > { %v1810_v13 = vmul.f32 1.442695, %v3931_v9 }
 0x365   : > { %v1808_v1 = vmul.f32 1.442695, %v3928_v6 }
 0x366   : > { %v1767_v3 = vpop.xlane.xlu0 %1766 }
 0x367   : > { %v3925_v53 = vsub.f32 %v1709_v44, %v1767_v3 }
 0x369   : > { %v1814_v8 = vmul.f32 1.442695, %v3925_v53 }
 0x36b   : > { %2542 = vpow2.f32 %v1814_v8 }
 0x36c   : > { %2544 = vpow2.f32 %v1808_v1 }
 0x36d   : > { %2546 = vpow2.f32 %v1810_v13  ;;  %v2541_v12 = vpop.eup %2540 }
 0x375   : > { %v2543_v18 = vpop.eup %2542 }
 0x376   : > { %v2383_v10 = vpop.f32.mrb[36].mxu1  ;;  %v2545_v20 = vpop.eup %2544 }
 0x377   : > { %v1745_v11 = vpop.f32.mrb[37].mxu1  ;;  %v3940_v17 = vadd.f32 %v2383_v10, %v2194_v36  ;;  %v2547_v21 = vpop.eup %2546 }
 0x378   : > { %v3934_v51 = vadd.f32 %v2194_v36, %v1745_v11  ;;  %v2384_v55 = vpop.f32.mrb[38].mxu1 }
 0x379   : > { %v1748_v57 = vpop.f32.mrb[39].mxu1  ;;  %v3943_v19 = vadd.f32 %v2384_v55, %v2194_v36 }
 0x37a   : > { %v3937_v0 = vadd.f32 %v2194_v36, %v1748_v57  ;;  %1784 = vmax.xlane.f32.xlu1 %v3934_v51 }
 0x37c   : > { %1786 = vmax.xlane.f32.xlu0 %v3937_v0 }
 0x37e   : > { %1788 = vmax.xlane.f32.xlu1 %v3940_v17 }
 0x380   : > { %1790 = vmax.xlane.f32.xlu0 %v3943_v19 }
 0x382   : > { %1844 = vadd.xlane.f32.xlu1 %v2541_v12 }
 0x384   : > { %1846 = vadd.xlane.f32.xlu0 %v2543_v18 }
 0x386   : > { %1840 = vadd.xlane.f32.xlu1 %v2545_v20 }
 0x388   : > { %1842 = vadd.xlane.f32.xlu0 %v2547_v21 }
 0x396   : > { %v1773_v15 = vpop.xlane.xlu1 %1772 }
 0x397   : > { %v3947_v2 = vsub.f32 %v1722_v45, %v1773_v15 }
 0x398   : > { %v1775_v22 = vpop.xlane.xlu0 %1774 }
 0x399   : > { %v1820_v23 = vmul.f32 1.442695, %v3947_v2  ;;  %v3950_v14 = vsub.f32 %v1725_v41, %v1775_v22 }
 0x39a   : > { %v1769_v25 = vpop.xlane.xlu1 %1768 }
 0x39b   : > { %2548 = vpow2.f32 %v1820_v23  ;;  %v1822_v26 = vmul.f32 1.442695, %v3950_v14  ;;  %v3953_v27 = vsub.f32 %v1714_v50, %v1769_v25 }
 0x39c   : > { %v1771_v28 = vpop.xlane.xlu0 %1770 }
 0x39d   : > { %2550 = vpow2.f32 %v1822_v26  ;;  %v1816_v29 = vmul.f32 1.442695, %v3953_v27  ;;  %v3957_v32 = vsub.f32 %v3908_v52, %v1771_v28 }
 0x39f   : > { %2552 = vpow2.f32 %v1816_v29  ;;  %v1818_v30 = vmul.f32 1.442695, %v3957_v32 }
 0x3a1   : > { %2554 = vpow2.f32 %v1818_v30 }
 0x3a5   : > { %v2549_v33 = vpop.eup %2548 }
 0x3a6   : > { %1852 = vadd.xlane.f32.xlu1 %v2549_v33 }
 0x3a7   : > { %v2551_v34 = vpop.eup %2550 }
 0x3a8   : > { %1854 = vadd.xlane.f32.xlu0 %v2551_v34 }
 0x3a9   : > { %v2553_v35 = vpop.eup %2552 }
 0x3aa   : > { %1848 = vadd.xlane.f32.xlu1 %v2553_v35 }
 0x3ab   : > { %v2555_v36 = vpop.eup %2554 }
 0x3ac   : > { %1850 = vadd.xlane.f32.xlu0 %v2555_v36 }
 0x3ce   : > { %v1781_v37 = vpop.xlane.xlu1 %1780 }
 0x3cf   : > { %v3961_v38 = vsub.f32 %v3911_v56, %v1781_v37 }
 0x3d0   : > { %v1783_v40 = vpop.xlane.xlu0 %1782 }
 0x3d1   : > { %v1828_v39 = vmul.f32 1.442695, %v3961_v38  ;;  %v3965_v42 = vsub.f32 %v3913_v59, %v1783_v40 }
 0x3d2   : > { %v1777_v43 = vpop.xlane.xlu1 %1776 }
 0x3d3   : > { %2556 = vpow2.f32 %v1828_v39  ;;  %v1830_v16 = vmul.f32 1.442695, %v3965_v42  ;;  %v3969_v44 = vsub.f32 %v3916_v61, %v1777_v43 }
 0x3d4   : > { %v1779_v31 = vpop.xlane.xlu0 %1778 }
 0x3d5   : > { %2558 = vpow2.f32 %v1830_v16  ;;  %v1824_v45 = vmul.f32 1.442695, %v3969_v44  ;;  %v3973_v46 = vsub.f32 %v3919_v62, %v1779_v31 }
 0x3d7   : > { %2560 = vpow2.f32 %v1824_v45  ;;  %v1826_v47 = vmul.f32 1.442695, %v3973_v46 }
 0x3d9   : > { %2562 = vpow2.f32 %v1826_v47 }
 0x3dd   : > { %v2557_v41 = vpop.eup %2556 }
 0x3de   : > { %1860 = vadd.xlane.f32.xlu1 %v2557_v41 }
 0x3df   : > { %v2559_v48 = vpop.eup %2558 }
 0x3e0   : > { %1862 = vadd.xlane.f32.xlu0 %v2559_v48 }
 0x3e1   : > { %v2561_v50 = vpop.eup %2560 }
 0x3e2   : > { %1856 = vadd.xlane.f32.xlu1 %v2561_v50 }
 0x3e3   : > { %v2563_v52 = vpop.eup %2562 }
 0x3e4   : > { %1858 = vadd.xlane.f32.xlu0 %v2563_v52 }
 0x407   : > { %v1785_v54 = vpop.xlane.xlu1 %1784 }
 0x408   : > { %v3977_v56 = vsub.f32 %v3934_v51, %v1785_v54 }
 0x409   : > { %v1787_v49 = vpop.xlane.xlu0 %1786 }
 0x40a   : > { %v1832_v58 = vmul.f32 1.442695, %v3977_v56  ;;  %v3981_v59 = vsub.f32 %v3937_v0, %v1787_v49 }
 0x40b   : > { %v1789_v60 = vpop.xlane.xlu1 %1788 }
 0x40c   : > { %2564 = vpow2.f32 %v1832_v58  ;;  %v1834_v61 = vmul.f32 1.442695, %v3981_v59  ;;  %v3985_v62 = vsub.f32 %v3940_v17, %v1789_v60 }
 0x40d   : > { %v1791_v24 = vpop.xlane.xlu0 %1790 }
 0x40e   : > { %2566 = vpow2.f32 %v1834_v61  ;;  %v1836_v63 = vmul.f32 1.442695, %v3985_v62  ;;  %v3989_v3 = vsub.f32 %v3943_v19, %v1791_v24 }
 0x40f   : > { %v1845_v5 = vpop.xlane.xlu1 %1844 }
 0x410   : > { %2568 = vpow2.f32 %v1836_v63  ;;  %v1838_v7 = vmul.f32 1.442695, %v3989_v3 }
 0x411   : > { %2570 = vlog2.f32 %v1845_v5  ;;  %v1847_v8 = vpop.xlane.xlu0 %1846 }
 0x412   : > { %2572 = vpow2.f32 %v1838_v7 }
 0x413   : > { %v1841_v1 = vpop.xlane.xlu1 %1840  ;;  %2574 = vlog2.f32 %v1847_v8 }
 0x414   : > { %2576 = vlog2.f32 %v1841_v1 }
 0x415   : > { %v1843_v10 = vpop.xlane.xlu0 %1842 }
 0x416   : > { %v2565_v11 = vpop.eup %2564  ;;  %2578 = vlog2.f32 %v1843_v10 }
 0x417   : > { %1864 = vadd.xlane.f32.xlu1 %v2565_v11 }
 0x418   : > { %v2567_v51 = vpop.eup %2566 }
 0x419   : > { %1866 = vadd.xlane.f32.xlu0 %v2567_v51 }
 0x41a   : > { %v2569_v55 = vpop.eup %2568 }
 0x41b   : > { %v2571_v57 = vpop.eup %2570  ;;  %1868 = vadd.xlane.f32.xlu1 %v2569_v55 }
 0x41c   : > { %v2573_v13 = vpop.eup %2572  ;;  %v1877_v0 = vmul.f32 0.6931472, %v2571_v57 }
 0x41d   : > { %v2575_v17 = vpop.eup %2574  ;;  %1870 = vadd.xlane.f32.xlu0 %v2573_v13 }
 0x41e   : > { %v2577_v19 = vpop.eup %2576  ;;  %v1906_v12 = vsub.f32 %v3923_v4, %v1877_v0  ;;  %v1879_v18 = vmul.f32 0.6931472, %v2575_v17 }
 0x41f   : > { %v1873_v20 = vmul.f32 0.6931472, %v2577_v19 }
 0x420   : > { %v2579_v21 = vpop.eup %2578  ;;  %1922 = vst [vmem:[%s3996_s25 + $0x10] sm:$0xff] %v1906_v12  ;;  %v1907_v15 = vsub.f32 %v3925_v53, %v1879_v18 }
 0x421   : > { %v1904_v22 = vsub.f32 %v3928_v6, %v1873_v20  ;;  %v1875_v23 = vmul.f32 0.6931472, %v2579_v21 }
 0x422   : > { %1923 = vst [vmem:[%s3996_s25 + $0x18] sm:$0xff] %v1907_v15 }
 0x423   : > { %1920 = vst [vmem:[%s3996_s25] sm:$0xff] %v1904_v22  ;;  %v1905_v25 = vsub.f32 %v3931_v9, %v1875_v23 }
 0x425   : > { %1921 = vst [vmem:[%s3996_s25 + $0x8] sm:$0xff] %v1905_v25 }
 0x433   : > { %v1853_v4 = vpop.xlane.xlu1 %1852 }
 0x434   : > { %2580 = vlog2.f32 %v1853_v4 }
 0x435   : > { %v1855_v26 = vpop.xlane.xlu0 %1854 }
 0x436   : > { %2582 = vlog2.f32 %v1855_v26 }
 0x437   : > { %v1849_v28 = vpop.xlane.xlu1 %1848 }
 0x438   : > { %2584 = vlog2.f32 %v1849_v28 }
 0x439   : > { %v1851_v29 = vpop.xlane.xlu0 %1850 }
 0x43a   : > { %2586 = vlog2.f32 %v1851_v29 }
 0x43e   : > { %v2581_v53 = vpop.eup %2580 }
 0x43f   : > { %v1885_v6 = vmul.f32 0.6931472, %v2581_v53 }
 0x440   : > { %v2583_v30 = vpop.eup %2582 }
 0x441   : > { %v1910_v33 = vsub.f32 %v3947_v2, %v1885_v6  ;;  %v1887_v34 = vmul.f32 0.6931472, %v2583_v30 }
 0x442   : > { %v2585_v9 = vpop.eup %2584 }
 0x443   : > { %1926 = vst [vmem:[%s3996_s25 + $0x30] sm:$0xff] %v1910_v33  ;;  %v1911_v35 = vsub.f32 %v3950_v14, %v1887_v34  ;;  %v1881_v36 = vmul.f32 0.6931472, %v2585_v9 }
 0x444   : > { %v2587_v37 = vpop.eup %2586 }
 0x445   : > { %1927 = vst [vmem:[%s3996_s25 + $0x38] sm:$0xff] %v1911_v35  ;;  %v1908_v40 = vsub.f32 %v3953_v27, %v1881_v36  ;;  %v1883_v39 = vmul.f32 0.6931472, %v2587_v37 }
 0x447   : > { %1924 = vst [vmem:[%s3996_s25 + $0x20] sm:$0xff] %v1908_v40  ;;  %v1909_v43 = vsub.f32 %v3957_v32, %v1883_v39 }
 0x449   : > { %1925 = vst [vmem:[%s3996_s25 + $0x28] sm:$0xff] %v1909_v43 }
 0x46b   : > { %v1861_v16 = vpop.xlane.xlu1 %1860 }
 0x46c   : > { %2588 = vlog2.f32 %v1861_v16 }
 0x46d   : > { %v1863_v31 = vpop.xlane.xlu0 %1862 }
 0x46e   : > { %2590 = vlog2.f32 %v1863_v31 }
 0x46f   : > { %v1857_v2 = vpop.xlane.xlu1 %1856 }
 0x470   : > { %2592 = vlog2.f32 %v1857_v2 }
 0x471   : > { %v1859_v14 = vpop.xlane.xlu0 %1858 }
 0x472   : > { %2594 = vlog2.f32 %v1859_v14 }
 0x476   : > { %v2589_v45 = vpop.eup %2588 }
 0x477   : > { %v1893_v47 = vmul.f32 0.6931472, %v2589_v45 }
 0x478   : > { %v2591_v27 = vpop.eup %2590 }
 0x479   : > { %v1914_v41 = vsub.f32 %v3961_v38, %v1893_v47  ;;  %v1895_v48 = vmul.f32 0.6931472, %v2591_v27 }
 0x47a   : > { %v2593_v32 = vpop.eup %2592 }
 0x47b   : > { %1930 = vst [vmem:[%s3996_s25 + $0x50] sm:$0xff] %v1914_v41  ;;  %v1915_v50 = vsub.f32 %v3965_v42, %v1895_v48  ;;  %v1889_v52 = vmul.f32 0.6931472, %v2593_v32 }
 0x47c   : > { %v2595_v54 = vpop.eup %2594 }
 0x47d   : > { %1931 = vst [vmem:[%s3996_s25 + $0x58] sm:$0xff] %v1915_v50  ;;  %v1912_v49 = vsub.f32 %v3969_v44, %v1889_v52  ;;  %v1891_v58 = vmul.f32 0.6931472, %v2595_v54 }
 0x47f   : > { %1928 = vst [vmem:[%s3996_s25 + $0x40] sm:$0xff] %v1912_v49  ;;  %v1913_v60 = vsub.f32 %v3973_v46, %v1891_v58 }
 0x481   : > { %1929 = vst [vmem:[%s3996_s25 + $0x48] sm:$0xff] %v1913_v60 }
 0x4a4   : > { %v1865_v61 = vpop.xlane.xlu1 %1864 }
 0x4a5   : > { %2596 = vlog2.f32 %v1865_v61 }
 0x4a6   : > { %v1867_v38 = vpop.xlane.xlu0 %1866 }
 0x4a7   : > { %2598 = vlog2.f32 %v1867_v38 }
 0x4a8   : > { %v1869_v24 = vpop.xlane.xlu1 %1868 }
 0x4a9   : > { %2600 = vlog2.f32 %v1869_v24 }
 0x4aa   : > { %v1871_v42 = vpop.xlane.xlu0 %1870 }
 0x4ab   : > { %2602 = vlog2.f32 %v1871_v42 }
 0x4af   : > { %v2597_v63 = vpop.eup %2596 }
 0x4b0   : > { %v1897_v5 = vmul.f32 0.6931472, %v2597_v63 }
 0x4b1   : > { %v2599_v44 = vpop.eup %2598 }
 0x4b2   : > { %v1916_v7 = vsub.f32 %v3977_v56, %v1897_v5  ;;  %v1899_v46 = vmul.f32 0.6931472, %v2599_v44 }
 0x4b3   : > { %v2601_v8 = vpop.eup %2600 }
 0x4b4   : > { %1932 = vst [vmem:[%s3996_s25 + $0x60] sm:$0xff] %v1916_v7  ;;  %v1917_v1 = vsub.f32 %v3981_v59, %v1899_v46  ;;  %v1901_v10 = vmul.f32 0.6931472, %v2601_v8 }
 0x4b5   : > { %v2603_v11 = vpop.eup %2602 }
 0x4b6   : > { %1933 = vst [vmem:[%s3996_s25 + $0x68] sm:$0xff] %v1917_v1  ;;  %v1918_v51 = vsub.f32 %v3985_v62, %v1901_v10  ;;  %v1903_v55 = vmul.f32 0.6931472, %v2603_v11 }
 0x4b8   : > { %1934 = vst [vmem:[%s3996_s25 + $0x70] sm:$0xff] %v1918_v51  ;;  %v1919_v56 = vsub.f32 %v3989_v3, %v1903_v55 }
 0x4ba   : > { %1935 = vst [vmem:[%s3996_s25 + $0x78] sm:$0xff] %v1919_v56 }
 0x4bb   : > { %2645 = shalt.err (!%p2642_p7)
}
 0x4bc   : > { %s2646_s9 = scalar_lea.hbm %s4031_s30, 2048  ;;  %s2650_s16 = scalar_lea.hbm %s4086_s5, 4096 }
 0x4bd   : > { %p2647_p8 = scmp.ne.s32.totalorder %s4031_s30, %s2646_s9  ;;  %p2651_p1 = scmp.lt.u32.totalorder %s4031_s30, %s4086_s5 }
 0x4be   : > { %p2652_p0 = scmp.lt.u32.totalorder %s2650_s16, %s2646_s9  ;;  %p2654_p6 = scmp.lt.u32.totalorder %s2646_s9, %s4031_s30 }
 0x4bf   : > { %p2648_p11 = pnand %p2647_p8, %p4145_p9 }
 0x4c0   : > { %p2653_p5 = por %p2652_p0, %p2651_p1 }
 0x4c1   : > { %p2649_p13 = pneg %p2648_p11 }
 0x4c2   : > { %p2655_p10 = por %p2654_p6, %p2653_p5 }
 0x4c4   : > { %p2656_p12 = pnand %p2655_p10, %p2649_p13 }
 0x4c6   : > { %2659 = shalt.err (!%p2656_p12)
}
 0x4c7   : > { %s2709_s25 = smov 128   ;;  %s2710_s26 = smov 8  }
 0x4c8   : > { %2405 = dma.vmem_to_hbm [thread:$0]  (%p4145_p9), %s4033_s6, 2048, %s4031_s30, %s4040_s22, %s2709_s25, %s2709_s25, %s2710_s26  }
 0x4c9 PF: > { %p2417_p2 = scmp.ge.s32.totalorder %s2698_s21, 2  ;;  %s1965_s7 = sand.u32 1, %s2686_s18  }
 0x4ca   : > { %p4146_p3 = scmp.ne.s32.totalorder %s4091_s29, 0  ;;  %s1966_s8 = scalar_lea.sflag [#allocation4], %s1965_s7 }
 0x4cc   : > { %p2412_p4 = pnand %p2417_p2, %p4146_p3 }
 0x4ce   : > { %2681 = dma.done.wait (!%p2412_p4), %s1966_s8, 2048  }
 0x4cf   : > { %2683 = vsyncadd (!%p2412_p4), %s1966_s8, 4294965248  ;;  %p16_p7 = scmp.ge.s32.totalorder %s2766_s24, 4   ;;  %s4147_s18 = smov %s2690_s19 }
 0x4d0   : > { %s4148_s19 = smov %s2694_s20  ;;  %s4149_s20 = smov %s2777_s27 }
 0x4d1   : > { %s4150_s21 = smov %s2766_s24  ;;  %18 = sbr.rel (!%p16_p7) target bundleno = 4 (0x4), region = 80 }
 0x4d8   :  { %1971 = vsyncpa [#allocation3], 1 }
 0x4d9   :  { %1973 = vsyncpa [#allocation3 + $0x1], 1 }
 0x4da   :  { %1974 = vsyncpa [#allocation4], 1 }
 0x4db   :  { %1976 = vsyncpa [#allocation4 + $0x1], 1 }

</bundles_post_ra>
